<compile_context>
chip_gen: v7x
topology: tpu7x:2x2x1
jax: 0.10.0
libtpu: 0.0.40
codegen_flags: <defaults>
</compile_context>

<pallas_src>
import functools

import jax
import jax.numpy as jnp
from jax import lax
from jax.experimental import pallas as pl
from jax.experimental.pallas import tpu as pltpu


def _round_up(x, m):
    return (x + m - 1) // m * m


def _pick_batch_blocks(B, S):
    """Shard the batch across grid steps (v7x's 2 TCs) only when each shard
    still has a reasonable amount of row work; otherwise keep one block."""
    nb = 1
    for cand in (2, 4):
        rows = (B // cand) * S if B % cand == 0 else 0
        if B % cand == 0 and rows >= 128 and rows % 8 == 0:
            nb = cand
    return nb


def _fold_mask(syntax_mask, num_blocks):
    """(B,S,S) additive mask -> (NB, R, R) block-diagonal additive mask with
    cross-batch pairs set to -1e9 (R = (B//NB)*S rows per block)."""
    B, S, _ = syntax_mask.shape
    Bb = B // num_blocks
    sm = syntax_mask.reshape(num_blocks, Bb, S, S)
    same = jnp.eye(Bb, dtype=bool)                                   # (Bb, Bb)
    full = jnp.broadcast_to(sm[:, :, :, None, :],
                            (num_blocks, Bb, S, Bb, S))              # sm[n,b,i,j] for all c
    full = jnp.where(same[None, :, None, :, None], full, -1e9)
    return full.reshape(num_blocks, Bb * S, Bb * S)


# ----------------------------------------------------------------------------
# Pallas kernel: the FULL encoder stack for one batch block.
# grid=(num_batch_blocks,), "parallel"; layers are a static unrolled loop.
# ----------------------------------------------------------------------------
def _encoder_stack_kernel(x_ref, mask_ref, w_ref, s_ref, out_ref,
                          *, true_f, compute_dtype):
    R, FP = out_ref.shape
    L = w_ref.shape[0]

    # Constants built once per grid step (not per layer).
    lane = lax.broadcasted_iota(jnp.int32, (1, FP), 1)
    lane_mask = (lane < true_f).astype(jnp.float32)
    inv_f = 1.0 / float(true_f)
    scale = 1.0 / float(true_f) ** 0.5

    mask = mask_ref[0].astype(jnp.float32)            # (R, R) additive, f32 in-kernel

    def mm(a, w):
        # Activations cast to the MXU feed dtype; weights are already stored in
        # compute_dtype (cast once at pack time).  Accumulate in f32.
        return jnp.dot(a.astype(compute_dtype), w,
                       preferred_element_type=jnp.float32)

    def layer_norm(z, g, b):
        # Stats over the TRUE feature width; z is masked before the mean so LN
        # does not depend on padded lanes being zero (pack_params still zero-pads,
        # which keeps padded lanes of every matmul output exactly 0).
        mu = jnp.sum(z * lane_mask, axis=-1, keepdims=True) * inv_f
        centered = (z - mu) * lane_mask
        var = jnp.sum(centered * centered, axis=-1, keepdims=True) * inv_f
        return centered * lax.rsqrt(var + 1e-5) * g + b

    x = x_ref[...]                                    # (R, FP) f32, padded lanes == 0

    for l in range(L):                                # L is static -> fully unrolled
        s = s_ref[l]                                  # (10, FP) f32: bq bk bv bo b1 b2 g1 be1 g2 be2
        wqkv = w_ref[l, :, 0:3 * FP]                  # (FP, 3FP)  [Wq|Wk|Wv]
        wo = w_ref[l, :, 3 * FP:4 * FP]               # (FP, FP)
        w1 = w_ref[l, :, 4 * FP:5 * FP]               # (FP, FP)  (dim_ff == d_model)
        w2 = w_ref[l, :, 5 * FP:6 * FP]               # (FP, FP)

        # --- fused QKV projection on the row slab --------------------------------
        qkv = mm(x, wqkv)                             # (R, 3FP) f32
        q = qkv[:, 0:FP] + s[0:1]
        k = qkv[:, FP:2 * FP] + s[1:2]
        v = qkv[:, 2 * FP:3 * FP] + s[2:3]

        # --- single-head attention, batch folded into rows ------------------------
        scores = lax.dot_general(
            q.astype(compute_dtype), k.astype(compute_dtype),
            (((1,), (1,)), ((), ())),
            preferred_element_type=jnp.float32)       # (R, R)
        scores = scores * scale + mask                # block-diagonal mask blocks cross-batch
        scores = scores - jnp.max(scores, axis=-1, keepdims=True)
        p = jnp.exp(scores)
        p = p * pl.reciprocal(jnp.sum(p, axis=-1, keepdims=True), approx=True)

        ctx = mm(p, v.astype(compute_dtype))          # (R, FP)
        attn = mm(ctx, wo) + s[3:4]

        # --- post-LN transformer encoder layer -----------------------------------
        h = layer_norm(x + attn, s[6:7], s[7:8])
        ff = jnp.maximum(mm(h, w1) + s[4:5], 0.0)
        ff = mm(ff, w2) + s[5:6]
        x = layer_norm(h + ff, s[8:9], s[9:10])

    out_ref[...] = x


def transformer_encoder_stack_pallas(x_rows, mask_folded, weights, scalars, *,
                                     true_f, compute_dtype=jnp.bfloat16):
    """x_rows: (B*S, FP) f32 zero-padded rows; mask_folded: (NB, R, R) bf16
    additive block-diagonal mask; weights: (L, FP, 6*FP) compute_dtype;
    scalars: (L, 10, FP) f32 biases + LN params."""
    BS, FP = x_rows.shape
    NB, R, _ = mask_folded.shape
    L, _, F6 = weights.shape
    assert NB * R == BS

    kernel = functools.partial(_encoder_stack_kernel,
                               true_f=true_f, compute_dtype=compute_dtype)

    # Explicit VMEM budget so the same kernel stays portable to v7x (64 MiB
    # physical / 32 MiB scoped default).
    w_bytes = weights.size * weights.dtype.itemsize
    s_bytes = scalars.size * scalars.dtype.itemsize
    blk_bytes = (2 * (2 * R * FP * 4)                                # x + out, double buffered
                 + 2 * (R * R * mask_folded.dtype.itemsize)
                 + w_bytes + s_bytes)
    vmem_limit = int(min(96 * 1024 * 1024, max(32 * 1024 * 1024, 4 * blk_bytes)))

    return pl.pallas_call(
        kernel,
        out_shape=jax.ShapeDtypeStruct((BS, FP), jnp.float32),
        grid=(NB,),
        in_specs=[
            pl.BlockSpec((R, FP), lambda b: (b, 0)),         # activation rows (aliased to out)
            pl.BlockSpec((1, R, R), lambda b: (b, 0, 0)),    # bf16 block-diagonal additive mask
            pl.BlockSpec((L, FP, F6), lambda b: (0, 0, 0)),  # all layers' weights, VMEM-resident
            pl.BlockSpec((L, 10, FP), lambda b: (0, 0, 0)),  # all layers' biases + LN params
        ],
        out_specs=pl.BlockSpec((R, FP), lambda b: (b, 0)),
        input_output_aliases={0: 0},                         # reuse x_rows' HBM buffer
        compiler_params=pltpu.CompilerParams(
            dimension_semantics=("parallel",),               # batch blocks are independent
            vmem_limit_bytes=vmem_limit),
    )(x_rows, mask_folded, weights, scalars)


# ----------------------------------------------------------------------------
# Parameter packing: one (L, FP, 6*FP) weight slab [Wq|Wk|Wv|Wo|W1|W2] and one
# (L, 10, FP) scalar slab [bq bk bv bo b1 b2 g1 be1 g2 be2], zero-padded to
# 128-lane widths.  Weights cast ONCE to weight_dtype; scalars stay f32.
# Zero padding keeps padded lanes of every matmul output exactly 0.
# ----------------------------------------------------------------------------
def pack_params(layers, F, FP, weight_dtype):
    def padw(w):
        assert w.shape == (F, F), "dim_feedforward == d_model in this module"
        return jnp.zeros((FP, FP), jnp.float32).at[:F, :F].set(w)

    def padb(b):
        return jnp.zeros((FP,), jnp.float32).at[:b.shape[-1]].set(b.reshape(-1))

    W, Sc = [], []
    for p in layers:
        W.append(jnp.concatenate(
            [padw(p["wq"]), padw(p["wk"]), padw(p["wv"]),
             padw(p["wo"]), padw(p["w1"]), padw(p["w2"])], axis=1))
        Sc.append(jnp.stack(
            [padb(p["bq"]), padb(p["bk"]), padb(p["bv"]), padb(p["bo"]),
             padb(p["b1"]), padb(p["b2"]),
             padb(p["g1"]), padb(p["be1"]), padb(p["g2"]), padb(p["be2"])]))
    return jnp.stack(W).astype(weight_dtype), jnp.stack(Sc)


# ----------------------------------------------------------------------------
# Pure-JAX reference (unpadded, f32) for correctness check.
# ----------------------------------------------------------------------------
def _encoder_layer_ref(x, mask, p):
    f = x.shape[-1]
    q = x @ p["wq"] + p["bq"]
    k = x @ p["wk"] + p["bk"]
    v = x @ p["wv"] + p["bv"]
    scores = jnp.einsum("bqd,bkd->bqk", q, k) / jnp.sqrt(jnp.float32(f)) + mask
    attn = jax.nn.softmax(scores, axis=-1)
    ctx = jnp.einsum("bqk,bkd->bqd", attn, v)
    attn_out = ctx @ p["wo"] + p["bo"]

    def ln(z, g, b):
        mu = jnp.mean(z, axis=-1, keepdims=True)
        var = jnp.mean((z - mu) ** 2, axis=-1, keepdims=True)
        return (z - mu) * jax.lax.rsqrt(var + 1e-5) * g + b

    h = ln(x + attn_out, p["g1"], p["be1"])
    ff = jnp.maximum(h @ p["w1"] + p["b1"], 0.0) @ p["w2"] + p["b2"]
    return ln(h + ff, p["g2"], p["be2"])


# ----------------------------------------------------------------------------
# Parameter init (deterministic, synthetic).
# ----------------------------------------------------------------------------
def init_layer_params(key, F, Fff):
    ks = jax.random.split(key, 8)
    s = 0.05
    return {
        "wq": s * jax.random.normal(ks[0], (F, F), jnp.float32),
        "wk": s * jax.random.normal(ks[1], (F, F), jnp.float32),
        "wv": s * jax.random.normal(ks[2], (F, F), jnp.float32),
        "bq": s * jax.random.normal(ks[3], (1, F), jnp.float32),
        "bk": jnp.zeros((1, F), jnp.float32),
        "bv": jnp.zeros((1, F), jnp.float32),
        "wo": s * jax.random.normal(ks[4], (F, F), jnp.float32),
        "bo": jnp.zeros((1, F), jnp.float32),
        "g1": jnp.ones((1, F), jnp.float32),
        "be1": jnp.zeros((1, F), jnp.float32),
        "w1": s * jax.random.normal(ks[5], (F, Fff), jnp.float32),
        "b1": s * jax.random.normal(ks[6], (1, Fff), jnp.float32),
        "w2": s * jax.random.normal(ks[7], (Fff, F), jnp.float32),
        "b2": jnp.zeros((1, F), jnp.float32),
        "g2": jnp.ones((1, F), jnp.float32),
        "be2": jnp.zeros((1, F), jnp.float32),
    }


# ----------------------------------------------------------------------------
# Full SyntaxPrefixEncoder forward.
# ----------------------------------------------------------------------------
def syntax_prefix_encoder_forward(params, input_ids, attention_mask,
                                  pos_ids, syntax_mask, use_pallas=True,
                                  compute_dtype=jnp.bfloat16):
    # --- MT5 encoder stand-in (frozen): token embedding lookup ---------------
    # TODO(synk): MT5EncoderModel.from_pretrained has no in-script equivalent;
    # replaced with a frozen deterministic embedding table producing
    # last_hidden_state of shape (B, S, hidden_size).
    last_hidden_state = params["mt5_tok_emb"][input_ids]            # (B,S,H)
    last_hidden_state = last_hidden_state * attention_mask[..., None].astype(jnp.float32)

    # --- pos embedding + concat (glue) ---------------------------------------
    pos_emb = params["emb_pos"][pos_ids]                            # (B,S,Hs)
    embedding = jnp.concatenate([last_hidden_state, pos_emb], axis=-1)  # (B,S,F)

    if not use_pallas:
        x = embedding
        for lp in params["layers"]:
            x = _encoder_layer_ref(x, syntax_mask, lp)
        return x

    # --- fused TransformerEncoder stack (Pallas hot path) ---------------------
    B, S, F = embedding.shape
    FP = _round_up(F, 128)
    weights, scalars = pack_params(params["layers"], F, FP, weight_dtype=compute_dtype)

    NB = _pick_batch_blocks(B, S)
    x_rows = jnp.zeros((B * S, FP), jnp.float32).at[:, :F].set(
        embedding.reshape(B * S, F))
    # Batch folded into the row axis; cross-batch attention blocked by a
    # block-diagonal additive mask, stored bf16 (half the VMEM residency).
    # TODO(synk): for large B*S, tile query rows instead of one (R,R) score block.
    mask_folded = _fold_mask(syntax_mask.astype(jnp.float32), NB).astype(jnp.bfloat16)

    out = transformer_encoder_stack_pallas(
        x_rows, mask_folded, weights, scalars,
        true_f=F, compute_dtype=compute_dtype)
    return out.reshape(B, S, FP)[:, :, :F]


if __name__ == "__main__":
    # Small, forward-consistent shapes.
    B, S = 2, 8
    hidden_size = 32          # MT5 hidden size stand-in
    syntax_hidden = 16
    F = hidden_size + syntax_hidden        # feature_hidden_size = 48
    syntax_num = 10
    num_layers = 2
    vocab = 100

    root = jax.random.PRNGKey(0)
    k_tok, k_pos, k_ids, k_pids, k_mask, k_layers = jax.random.split(root, 6)

    params = {
        "mt5_tok_emb": 0.1 * jax.random.normal(k_tok, (vocab, hidden_size), jnp.float32),
        "emb_pos": 0.1 * jax.random.normal(k_pos, (syntax_num, syntax_hidden), jnp.float32),
        "layers": [init_layer_params(k, F, F)
                   for k in jax.random.split(k_layers, num_layers)],
    }

    input_ids = jax.random.randint(k_ids, (B, S), 0, vocab)
    attention_mask = jnp.ones((B, S), jnp.int32)
    pos_ids = jax.random.randint(k_pids, (B, S), 0, syntax_num)

    # encoder_syntax_mask: additive float attention mask (B, S, S);
    # blocked entries get -1e9, diagonal always allowed.
    blocked = jax.random.bernoulli(k_mask, 0.3, (B, S, S))
    blocked = blocked & ~jnp.eye(S, dtype=bool)[None]
    syntax_mask = jnp.where(blocked, -1e9, 0.0).astype(jnp.float32)

    # Default path: bf16 weight storage + bf16 MXU feeds (f32 accumulation,
    # f32 softmax/LN).  Checked against the f32 reference with a bf16-appropriate
    # tolerance; the f32 compute path is also run and checked tightly.
    out_bf16 = syntax_prefix_encoder_forward(params, input_ids, attention_mask,
                                             pos_ids, syntax_mask, use_pallas=True)
    out_bf16 = jax.block_until_ready(out_bf16)

    out_f32 = syntax_prefix_encoder_forward(params, input_ids, attention_mask,
                                            pos_ids, syntax_mask, use_pallas=True,
                                            compute_dtype=jnp.float32)
    out_f32 = jax.block_until_ready(out_f32)

    ref = syntax_prefix_encoder_forward(params, input_ids, attention_mask,
                                        pos_ids, syntax_mask, use_pallas=False)

    assert out_bf16.shape == (B, S, F)
    assert jnp.allclose(out_f32, ref, atol=2e-3, rtol=2e-3), "Pallas f32/ref mismatch"
    assert jnp.allclose(out_bf16, ref, atol=5e-2, rtol=5e-2), "Pallas bf16/ref mismatch"

    print("KERNEL_OK")
</pallas_src>

<mosaic_0001>
module attributes {stable_mosaic.version = 11 : i64} {
  func.func @_encoder_stack_kernel(%arg0: i32, %arg1: memref<16x128xf32, #tpu.memory_space<vmem>>, %arg2: memref<1x16x16xbf16, #tpu.memory_space<vmem>>, %arg3: memref<2x128x768xbf16, #tpu.memory_space<vmem>>, %arg4: memref<2x10x128xf32, #tpu.memory_space<vmem>>, %arg5: memref<16x128xf32, #tpu.memory_space<vmem>>) attributes {dimension_semantics = [#tpu.dimension_semantics<parallel>], iteration_bounds = array<i64: 1>, scalar_prefetch = 0 : i64, scratch_operands = 0 : i64, tpu.core_type = #tpu.core_type<tc>, window_params = [{transform_indices = @transform_0, window_bounds = array<i64: 16, 128>}, {transform_indices = @transform_1, window_bounds = array<i64: 1, 16, 16>}, {pipeline_mode = #tpu.pipeline_mode<synchronous>, transform_indices = @transform_2, window_bounds = array<i64: 2, 128, 768>}, {pipeline_mode = #tpu.pipeline_mode<synchronous>, transform_indices = @transform_3, window_bounds = array<i64: 2, 10, 128>}, {transform_indices = @transform_4, window_bounds = array<i64: 16, 128>}]} {
    %0 = tpu.iota {dimensions = array<i32: 1>} : vector<1x128xi32>
    %c48_i32 = arith.constant 48 : i32
    %1 = vector.broadcast %c48_i32 : i32 to vector<1x128xi32>
    %2 = arith.cmpi slt, %0, %1 : vector<1x128xi32>
    %3 = arith.extui %2 : vector<1x128xi1> to vector<1x128xi32>
    %4 = arith.sitofp %3 : vector<1x128xi32> to vector<1x128xf32>
    %c0 = arith.constant 0 : index
    %c0_0 = arith.constant 0 : index
    %c0_1 = arith.constant 0 : index
    %5 = vector.load %arg2[%c0, %c0_0, %c0_1] : memref<1x16x16xbf16, #tpu.memory_space<vmem>>, vector<1x16x16xbf16>
    %6 = vector.shape_cast %5 : vector<1x16x16xbf16> to vector<16x16xbf16>
    %7 = arith.extf %6 : vector<16x16xbf16> to vector<16x16xf32>
    %c0_2 = arith.constant 0 : index
    %c0_3 = arith.constant 0 : index
    %8 = vector.load %arg1[%c0_2, %c0_3] : memref<16x128xf32, #tpu.memory_space<vmem>>, vector<16x128xf32>
    %c0_4 = arith.constant 0 : index
    %c0_5 = arith.constant 0 : index
    %c0_6 = arith.constant 0 : index
    %9 = vector.load %arg4[%c0_4, %c0_5, %c0_6] : memref<2x10x128xf32, #tpu.memory_space<vmem>>, vector<1x10x128xf32>
    %10 = vector.shape_cast %9 : vector<1x10x128xf32> to vector<10x128xf32>
    %c0_7 = arith.constant 0 : index
    %c0_8 = arith.constant 0 : index
    %c0_9 = arith.constant 0 : index
    %11 = vector.load %arg3[%c0_7, %c0_8, %c0_9] : memref<2x128x768xbf16, #tpu.memory_space<vmem>>, vector<1x128x384xbf16>
    %12 = vector.shape_cast %11 : vector<1x128x384xbf16> to vector<128x384xbf16>
    %c0_10 = arith.constant 0 : index
    %c0_11 = arith.constant 0 : index
    %c384 = arith.constant 384 : index
    %13 = vector.load %arg3[%c0_10, %c0_11, %c384] : memref<2x128x768xbf16, #tpu.memory_space<vmem>>, vector<1x128x128xbf16>
    %14 = vector.shape_cast %13 : vector<1x128x128xbf16> to vector<128x128xbf16>
    %c0_12 = arith.constant 0 : index
    %c0_13 = arith.constant 0 : index
    %c512 = arith.constant 512 : index
    %15 = vector.load %arg3[%c0_12, %c0_13, %c512] : memref<2x128x768xbf16, #tpu.memory_space<vmem>>, vector<1x128x128xbf16>
    %16 = vector.shape_cast %15 : vector<1x128x128xbf16> to vector<128x128xbf16>
    %c0_14 = arith.constant 0 : index
    %c0_15 = arith.constant 0 : index
    %c640 = arith.constant 640 : index
    %17 = vector.load %arg3[%c0_14, %c0_15, %c640] : memref<2x128x768xbf16, #tpu.memory_space<vmem>>, vector<1x128x128xbf16>
    %18 = vector.shape_cast %17 : vector<1x128x128xbf16> to vector<128x128xbf16>
    %19 = arith.truncf %8 : vector<16x128xf32> to vector<16x128xbf16>
    %cst = arith.constant dense<0.000000e+00> : vector<16x384xf32>
    %20 = tpu.matmul %19, %12, %cst {dimension_numbers = #tpu.dot_dimension_numbers<[1], [0], [0], [1], [0, 0, 1, 1], [], []>} : vector<16x128xbf16>, vector<128x384xbf16>, vector<16x384xf32> -> vector<16x384xf32>
    %21 = vector.extract_strided_slice %20 {offsets = [0, 0], sizes = [16, 128], strides = [1, 1]} : vector<16x384xf32> to vector<16x128xf32>
    %22 = vector.extract_strided_slice %10 {offsets = [0, 0], sizes = [1, 128], strides = [1, 1]} : vector<10x128xf32> to vector<1x128xf32>
    %23 = vector.broadcast %22 : vector<1x128xf32> to vector<16x128xf32>
    %24 = arith.addf %21, %23 : vector<16x128xf32>
    %25 = vector.extract_strided_slice %20 {offsets = [0, 128], sizes = [16, 128], strides = [1, 1]} : vector<16x384xf32> to vector<16x128xf32>
    %26 = vector.extract_strided_slice %10 {offsets = [1, 0], sizes = [1, 128], strides = [1, 1]} : vector<10x128xf32> to vector<1x128xf32>
    %27 = vector.broadcast %26 : vector<1x128xf32> to vector<16x128xf32>
    %28 = arith.addf %25, %27 : vector<16x128xf32>
    %29 = vector.extract_strided_slice %20 {offsets = [0, 256], sizes = [16, 128], strides = [1, 1]} : vector<16x384xf32> to vector<16x128xf32>
    %30 = vector.extract_strided_slice %10 {offsets = [2, 0], sizes = [1, 128], strides = [1, 1]} : vector<10x128xf32> to vector<1x128xf32>
    %31 = vector.broadcast %30 : vector<1x128xf32> to vector<16x128xf32>
    %32 = arith.addf %29, %31 : vector<16x128xf32>
    %33 = arith.truncf %24 : vector<16x128xf32> to vector<16x128xbf16>
    %34 = arith.truncf %28 : vector<16x128xf32> to vector<16x128xbf16>
    %cst_16 = arith.constant dense<0.000000e+00> : vector<16x16xf32>
    %35 = tpu.matmul %33, %34, %cst_16 {dimension_numbers = #tpu.dot_dimension_numbers<[1], [1], [0], [0], [0, 0, 1, 0], [], []>} : vector<16x128xbf16>, vector<16x128xbf16>, vector<16x16xf32> -> vector<16x16xf32>
    %cst_17 = arith.constant 0.144337565 : f32
    %36 = vector.broadcast %cst_17 : f32 to vector<16x16xf32>
    %37 = arith.mulf %35, %36 : vector<16x16xf32>
    %38 = arith.addf %37, %7 : vector<16x16xf32>
    %cst_18 = arith.constant dense<0xFF800000> : vector<16xf32>
    %39 = vector.multi_reduction <maximumf>, %38, %cst_18 [1] : vector<16x16xf32> to vector<16xf32>
    %40 = vector.shape_cast %39 : vector<16xf32> to vector<16x1xf32>
    %41 = vector.broadcast %40 : vector<16x1xf32> to vector<16x16xf32>
    %42 = arith.subf %38, %41 : vector<16x16xf32>
    %43 = math.exp %42 : vector<16x16xf32>
    %cst_19 = arith.constant dense<0.000000e+00> : vector<16xf32>
    %44 = vector.multi_reduction <add>, %43, %cst_19 [1] : vector<16x16xf32> to vector<16xf32>
    %45 = vector.shape_cast %44 : vector<16xf32> to vector<16x1xf32>
    %46 = tpu.reciprocal %45 {approx = true} : vector<16x1xf32> -> vector<16x1xf32>
    %47 = vector.broadcast %46 : vector<16x1xf32> to vector<16x16xf32>
    %48 = arith.mulf %43, %47 : vector<16x16xf32>
    %49 = arith.truncf %32 : vector<16x128xf32> to vector<16x128xbf16>
    %50 = arith.truncf %48 : vector<16x16xf32> to vector<16x16xbf16>
    %cst_20 = arith.constant dense<0.000000e+00> : vector<16x128xf32>
    %51 = tpu.matmul %50, %49, %cst_20 {dimension_numbers = #tpu.dot_dimension_numbers<[1], [0], [0], [1], [0, 0, 1, 1], [], []>} : vector<16x16xbf16>, vector<16x128xbf16>, vector<16x128xf32> -> vector<16x128xf32>
    %52 = arith.truncf %51 : vector<16x128xf32> to vector<16x128xbf16>
    %cst_21 = arith.constant dense<0.000000e+00> : vector<16x128xf32>
    %53 = tpu.matmul %52, %14, %cst_21 {dimension_numbers = #tpu.dot_dimension_numbers<[1], [0], [0], [1], [0, 0, 1, 1], [], []>} : vector<16x128xbf16>, vector<128x128xbf16>, vector<16x128xf32> -> vector<16x128xf32>
    %54 = vector.extract_strided_slice %10 {offsets = [3, 0], sizes = [1, 128], strides = [1, 1]} : vector<10x128xf32> to vector<1x128xf32>
    %55 = vector.broadcast %54 : vector<1x128xf32> to vector<16x128xf32>
    %56 = arith.addf %53, %55 : vector<16x128xf32>
    %57 = arith.addf %8, %56 : vector<16x128xf32>
    %58 = vector.extract_strided_slice %10 {offsets = [6, 0], sizes = [1, 128], strides = [1, 1]} : vector<10x128xf32> to vector<1x128xf32>
    %59 = vector.extract_strided_slice %10 {offsets = [7, 0], sizes = [1, 128], strides = [1, 1]} : vector<10x128xf32> to vector<1x128xf32>
    %60 = vector.broadcast %4 : vector<1x128xf32> to vector<16x128xf32>
    %61 = arith.mulf %57, %60 : vector<16x128xf32>
    %cst_22 = arith.constant dense<0.000000e+00> : vector<16xf32>
    %62 = vector.multi_reduction <add>, %61, %cst_22 [1] : vector<16x128xf32> to vector<16xf32>
    %63 = vector.shape_cast %62 : vector<16xf32> to vector<16x1xf32>
    %cst_23 = arith.constant 0.020833334 : f32
    %64 = vector.broadcast %cst_23 : f32 to vector<16x1xf32>
    %65 = arith.mulf %63, %64 : vector<16x1xf32>
    %66 = vector.broadcast %65 : vector<16x1xf32> to vector<16x128xf32>
    %67 = arith.subf %57, %66 : vector<16x128xf32>
    %68 = vector.broadcast %4 : vector<1x128xf32> to vector<16x128xf32>
    %69 = arith.mulf %67, %68 : vector<16x128xf32>
    %70 = arith.mulf %69, %69 : vector<16x128xf32>
    %cst_24 = arith.constant dense<0.000000e+00> : vector<16xf32>
    %71 = vector.multi_reduction <add>, %70, %cst_24 [1] : vector<16x128xf32> to vector<16xf32>
    %72 = vector.shape_cast %71 : vector<16xf32> to vector<16x1xf32>
    %cst_25 = arith.constant 0.020833334 : f32
    %73 = vector.broadcast %cst_25 : f32 to vector<16x1xf32>
    %74 = arith.mulf %72, %73 : vector<16x1xf32>
    %cst_26 = arith.constant 9.99999974E-6 : f32
    %75 = vector.broadcast %cst_26 : f32 to vector<16x1xf32>
    %76 = arith.addf %74, %75 : vector<16x1xf32>
    %77 = math.rsqrt %76 : vector<16x1xf32>
    %78 = vector.broadcast %77 : vector<16x1xf32> to vector<16x128xf32>
    %79 = arith.mulf %69, %78 : vector<16x128xf32>
    %80 = vector.broadcast %58 : vector<1x128xf32> to vector<16x128xf32>
    %81 = arith.mulf %79, %80 : vector<16x128xf32>
    %82 = vector.broadcast %59 : vector<1x128xf32> to vector<16x128xf32>
    %83 = arith.addf %81, %82 : vector<16x128xf32>
    %84 = arith.truncf %83 : vector<16x128xf32> to vector<16x128xbf16>
    %cst_27 = arith.constant dense<0.000000e+00> : vector<16x128xf32>
    %85 = tpu.matmul %84, %16, %cst_27 {dimension_numbers = #tpu.dot_dimension_numbers<[1], [0], [0], [1], [0, 0, 1, 1], [], []>} : vector<16x128xbf16>, vector<128x128xbf16>, vector<16x128xf32> -> vector<16x128xf32>
    %86 = vector.extract_strided_slice %10 {offsets = [4, 0], sizes = [1, 128], strides = [1, 1]} : vector<10x128xf32> to vector<1x128xf32>
    %87 = vector.broadcast %86 : vector<1x128xf32> to vector<16x128xf32>
    %88 = arith.addf %85, %87 : vector<16x128xf32>
    %cst_28 = arith.constant 0.000000e+00 : f32
    %89 = vector.broadcast %cst_28 : f32 to vector<16x128xf32>
    %90 = arith.maximumf %88, %89 : vector<16x128xf32>
    %91 = arith.truncf %90 : vector<16x128xf32> to vector<16x128xbf16>
    %cst_29 = arith.constant dense<0.000000e+00> : vector<16x128xf32>
    %92 = tpu.matmul %91, %18, %cst_29 {dimension_numbers = #tpu.dot_dimension_numbers<[1], [0], [0], [1], [0, 0, 1, 1], [], []>} : vector<16x128xbf16>, vector<128x128xbf16>, vector<16x128xf32> -> vector<16x128xf32>
    %93 = vector.extract_strided_slice %10 {offsets = [5, 0], sizes = [1, 128], strides = [1, 1]} : vector<10x128xf32> to vector<1x128xf32>
    %94 = vector.broadcast %93 : vector<1x128xf32> to vector<16x128xf32>
    %95 = arith.addf %92, %94 : vector<16x128xf32>
    %96 = arith.addf %83, %95 : vector<16x128xf32>
    %97 = vector.extract_strided_slice %10 {offsets = [8, 0], sizes = [1, 128], strides = [1, 1]} : vector<10x128xf32> to vector<1x128xf32>
    %98 = vector.extract_strided_slice %10 {offsets = [9, 0], sizes = [1, 128], strides = [1, 1]} : vector<10x128xf32> to vector<1x128xf32>
    %99 = vector.broadcast %4 : vector<1x128xf32> to vector<16x128xf32>
    %100 = arith.mulf %96, %99 : vector<16x128xf32>
    %cst_30 = arith.constant dense<0.000000e+00> : vector<16xf32>
    %101 = vector.multi_reduction <add>, %100, %cst_30 [1] : vector<16x128xf32> to vector<16xf32>
    %102 = vector.shape_cast %101 : vector<16xf32> to vector<16x1xf32>
    %cst_31 = arith.constant 0.020833334 : f32
    %103 = vector.broadcast %cst_31 : f32 to vector<16x1xf32>
    %104 = arith.mulf %102, %103 : vector<16x1xf32>
    %105 = vector.broadcast %104 : vector<16x1xf32> to vector<16x128xf32>
    %106 = arith.subf %96, %105 : vector<16x128xf32>
    %107 = vector.broadcast %4 : vector<1x128xf32> to vector<16x128xf32>
    %108 = arith.mulf %106, %107 : vector<16x128xf32>
    %109 = arith.mulf %108, %108 : vector<16x128xf32>
    %cst_32 = arith.constant dense<0.000000e+00> : vector<16xf32>
    %110 = vector.multi_reduction <add>, %109, %cst_32 [1] : vector<16x128xf32> to vector<16xf32>
    %111 = vector.shape_cast %110 : vector<16xf32> to vector<16x1xf32>
    %cst_33 = arith.constant 0.020833334 : f32
    %112 = vector.broadcast %cst_33 : f32 to vector<16x1xf32>
    %113 = arith.mulf %111, %112 : vector<16x1xf32>
    %cst_34 = arith.constant 9.99999974E-6 : f32
    %114 = vector.broadcast %cst_34 : f32 to vector<16x1xf32>
    %115 = arith.addf %113, %114 : vector<16x1xf32>
    %116 = math.rsqrt %115 : vector<16x1xf32>
    %117 = vector.broadcast %116 : vector<16x1xf32> to vector<16x128xf32>
    %118 = arith.mulf %108, %117 : vector<16x128xf32>
    %119 = vector.broadcast %97 : vector<1x128xf32> to vector<16x128xf32>
    %120 = arith.mulf %118, %119 : vector<16x128xf32>
    %121 = vector.broadcast %98 : vector<1x128xf32> to vector<16x128xf32>
    %122 = arith.addf %120, %121 : vector<16x128xf32>
    %c1 = arith.constant 1 : index
    %c0_35 = arith.constant 0 : index
    %c0_36 = arith.constant 0 : index
    %123 = vector.load %arg4[%c1, %c0_35, %c0_36] : memref<2x10x128xf32, #tpu.memory_space<vmem>>, vector<1x10x128xf32>
    %124 = vector.shape_cast %123 : vector<1x10x128xf32> to vector<10x128xf32>
    %c1_37 = arith.constant 1 : index
    %c0_38 = arith.constant 0 : index
    %c0_39 = arith.constant 0 : index
    %125 = vector.load %arg3[%c1_37, %c0_38, %c0_39] : memref<2x128x768xbf16, #tpu.memory_space<vmem>>, vector<1x128x384xbf16>
    %126 = vector.shape_cast %125 : vector<1x128x384xbf16> to vector<128x384xbf16>
    %c1_40 = arith.constant 1 : index
    %c0_41 = arith.constant 0 : index
    %c384_42 = arith.constant 384 : index
    %127 = vector.load %arg3[%c1_40, %c0_41, %c384_42] : memref<2x128x768xbf16, #tpu.memory_space<vmem>>, vector<1x128x128xbf16>
    %128 = vector.shape_cast %127 : vector<1x128x128xbf16> to vector<128x128xbf16>
    %c1_43 = arith.constant 1 : index
    %c0_44 = arith.constant 0 : index
    %c512_45 = arith.constant 512 : index
    %129 = vector.load %arg3[%c1_43, %c0_44, %c512_45] : memref<2x128x768xbf16, #tpu.memory_space<vmem>>, vector<1x128x128xbf16>
    %130 = vector.shape_cast %129 : vector<1x128x128xbf16> to vector<128x128xbf16>
    %c1_46 = arith.constant 1 : index
    %c0_47 = arith.constant 0 : index
    %c640_48 = arith.constant 640 : index
    %131 = vector.load %arg3[%c1_46, %c0_47, %c640_48] : memref<2x128x768xbf16, #tpu.memory_space<vmem>>, vector<1x128x128xbf16>
    %132 = vector.shape_cast %131 : vector<1x128x128xbf16> to vector<128x128xbf16>
    %133 = arith.truncf %122 : vector<16x128xf32> to vector<16x128xbf16>
    %cst_49 = arith.constant dense<0.000000e+00> : vector<16x384xf32>
    %134 = tpu.matmul %133, %126, %cst_49 {dimension_numbers = #tpu.dot_dimension_numbers<[1], [0], [0], [1], [0, 0, 1, 1], [], []>} : vector<16x128xbf16>, vector<128x384xbf16>, vector<16x384xf32> -> vector<16x384xf32>
    %135 = vector.extract_strided_slice %134 {offsets = [0, 0], sizes = [16, 128], strides = [1, 1]} : vector<16x384xf32> to vector<16x128xf32>
    %136 = vector.extract_strided_slice %124 {offsets = [0, 0], sizes = [1, 128], strides = [1, 1]} : vector<10x128xf32> to vector<1x128xf32>
    %137 = vector.broadcast %136 : vector<1x128xf32> to vector<16x128xf32>
    %138 = arith.addf %135, %137 : vector<16x128xf32>
    %139 = vector.extract_strided_slice %134 {offsets = [0, 128], sizes = [16, 128], strides = [1, 1]} : vector<16x384xf32> to vector<16x128xf32>
    %140 = vector.extract_strided_slice %124 {offsets = [1, 0], sizes = [1, 128], strides = [1, 1]} : vector<10x128xf32> to vector<1x128xf32>
    %141 = vector.broadcast %140 : vector<1x128xf32> to vector<16x128xf32>
    %142 = arith.addf %139, %141 : vector<16x128xf32>
    %143 = vector.extract_strided_slice %134 {offsets = [0, 256], sizes = [16, 128], strides = [1, 1]} : vector<16x384xf32> to vector<16x128xf32>
    %144 = vector.extract_strided_slice %124 {offsets = [2, 0], sizes = [1, 128], strides = [1, 1]} : vector<10x128xf32> to vector<1x128xf32>
    %145 = vector.broadcast %144 : vector<1x128xf32> to vector<16x128xf32>
    %146 = arith.addf %143, %145 : vector<16x128xf32>
    %147 = arith.truncf %138 : vector<16x128xf32> to vector<16x128xbf16>
    %148 = arith.truncf %142 : vector<16x128xf32> to vector<16x128xbf16>
    %cst_50 = arith.constant dense<0.000000e+00> : vector<16x16xf32>
    %149 = tpu.matmul %147, %148, %cst_50 {dimension_numbers = #tpu.dot_dimension_numbers<[1], [1], [0], [0], [0, 0, 1, 0], [], []>} : vector<16x128xbf16>, vector<16x128xbf16>, vector<16x16xf32> -> vector<16x16xf32>
    %cst_51 = arith.constant 0.144337565 : f32
    %150 = vector.broadcast %cst_51 : f32 to vector<16x16xf32>
    %151 = arith.mulf %149, %150 : vector<16x16xf32>
    %152 = arith.addf %151, %7 : vector<16x16xf32>
    %cst_52 = arith.constant dense<0xFF800000> : vector<16xf32>
    %153 = vector.multi_reduction <maximumf>, %152, %cst_52 [1] : vector<16x16xf32> to vector<16xf32>
    %154 = vector.shape_cast %153 : vector<16xf32> to vector<16x1xf32>
    %155 = vector.broadcast %154 : vector<16x1xf32> to vector<16x16xf32>
    %156 = arith.subf %152, %155 : vector<16x16xf32>
    %157 = math.exp %156 : vector<16x16xf32>
    %cst_53 = arith.constant dense<0.000000e+00> : vector<16xf32>
    %158 = vector.multi_reduction <add>, %157, %cst_53 [1] : vector<16x16xf32> to vector<16xf32>
    %159 = vector.shape_cast %158 : vector<16xf32> to vector<16x1xf32>
    %160 = tpu.reciprocal %159 {approx = true} : vector<16x1xf32> -> vector<16x1xf32>
    %161 = vector.broadcast %160 : vector<16x1xf32> to vector<16x16xf32>
    %162 = arith.mulf %157, %161 : vector<16x16xf32>
    %163 = arith.truncf %146 : vector<16x128xf32> to vector<16x128xbf16>
    %164 = arith.truncf %162 : vector<16x16xf32> to vector<16x16xbf16>
    %cst_54 = arith.constant dense<0.000000e+00> : vector<16x128xf32>
    %165 = tpu.matmul %164, %163, %cst_54 {dimension_numbers = #tpu.dot_dimension_numbers<[1], [0], [0], [1], [0, 0, 1, 1], [], []>} : vector<16x16xbf16>, vector<16x128xbf16>, vector<16x128xf32> -> vector<16x128xf32>
    %166 = arith.truncf %165 : vector<16x128xf32> to vector<16x128xbf16>
    %cst_55 = arith.constant dense<0.000000e+00> : vector<16x128xf32>
    %167 = tpu.matmul %166, %128, %cst_55 {dimension_numbers = #tpu.dot_dimension_numbers<[1], [0], [0], [1], [0, 0, 1, 1], [], []>} : vector<16x128xbf16>, vector<128x128xbf16>, vector<16x128xf32> -> vector<16x128xf32>
    %168 = vector.extract_strided_slice %124 {offsets = [3, 0], sizes = [1, 128], strides = [1, 1]} : vector<10x128xf32> to vector<1x128xf32>
    %169 = vector.broadcast %168 : vector<1x128xf32> to vector<16x128xf32>
    %170 = arith.addf %167, %169 : vector<16x128xf32>
    %171 = arith.addf %122, %170 : vector<16x128xf32>
    %172 = vector.extract_strided_slice %124 {offsets = [6, 0], sizes = [1, 128], strides = [1, 1]} : vector<10x128xf32> to vector<1x128xf32>
    %173 = vector.extract_strided_slice %124 {offsets = [7, 0], sizes = [1, 128], strides = [1, 1]} : vector<10x128xf32> to vector<1x128xf32>
    %174 = vector.broadcast %4 : vector<1x128xf32> to vector<16x128xf32>
    %175 = arith.mulf %171, %174 : vector<16x128xf32>
    %cst_56 = arith.constant dense<0.000000e+00> : vector<16xf32>
    %176 = vector.multi_reduction <add>, %175, %cst_56 [1] : vector<16x128xf32> to vector<16xf32>
    %177 = vector.shape_cast %176 : vector<16xf32> to vector<16x1xf32>
    %cst_57 = arith.constant 0.020833334 : f32
    %178 = vector.broadcast %cst_57 : f32 to vector<16x1xf32>
    %179 = arith.mulf %177, %178 : vector<16x1xf32>
    %180 = vector.broadcast %179 : vector<16x1xf32> to vector<16x128xf32>
    %181 = arith.subf %171, %180 : vector<16x128xf32>
    %182 = vector.broadcast %4 : vector<1x128xf32> to vector<16x128xf32>
    %183 = arith.mulf %181, %182 : vector<16x128xf32>
    %184 = arith.mulf %183, %183 : vector<16x128xf32>
    %cst_58 = arith.constant dense<0.000000e+00> : vector<16xf32>
    %185 = vector.multi_reduction <add>, %184, %cst_58 [1] : vector<16x128xf32> to vector<16xf32>
    %186 = vector.shape_cast %185 : vector<16xf32> to vector<16x1xf32>
    %cst_59 = arith.constant 0.020833334 : f32
    %187 = vector.broadcast %cst_59 : f32 to vector<16x1xf32>
    %188 = arith.mulf %186, %187 : vector<16x1xf32>
    %cst_60 = arith.constant 9.99999974E-6 : f32
    %189 = vector.broadcast %cst_60 : f32 to vector<16x1xf32>
    %190 = arith.addf %188, %189 : vector<16x1xf32>
    %191 = math.rsqrt %190 : vector<16x1xf32>
    %192 = vector.broadcast %191 : vector<16x1xf32> to vector<16x128xf32>
    %193 = arith.mulf %183, %192 : vector<16x128xf32>
    %194 = vector.broadcast %172 : vector<1x128xf32> to vector<16x128xf32>
    %195 = arith.mulf %193, %194 : vector<16x128xf32>
    %196 = vector.broadcast %173 : vector<1x128xf32> to vector<16x128xf32>
    %197 = arith.addf %195, %196 : vector<16x128xf32>
    %198 = arith.truncf %197 : vector<16x128xf32> to vector<16x128xbf16>
    %cst_61 = arith.constant dense<0.000000e+00> : vector<16x128xf32>
    %199 = tpu.matmul %198, %130, %cst_61 {dimension_numbers = #tpu.dot_dimension_numbers<[1], [0], [0], [1], [0, 0, 1, 1], [], []>} : vector<16x128xbf16>, vector<128x128xbf16>, vector<16x128xf32> -> vector<16x128xf32>
    %200 = vector.extract_strided_slice %124 {offsets = [4, 0], sizes = [1, 128], strides = [1, 1]} : vector<10x128xf32> to vector<1x128xf32>
    %201 = vector.broadcast %200 : vector<1x128xf32> to vector<16x128xf32>
    %202 = arith.addf %199, %201 : vector<16x128xf32>
    %cst_62 = arith.constant 0.000000e+00 : f32
    %203 = vector.broadcast %cst_62 : f32 to vector<16x128xf32>
    %204 = arith.maximumf %202, %203 : vector<16x128xf32>
    %205 = arith.truncf %204 : vector<16x128xf32> to vector<16x128xbf16>
    %cst_63 = arith.constant dense<0.000000e+00> : vector<16x128xf32>
    %206 = tpu.matmul %205, %132, %cst_63 {dimension_numbers = #tpu.dot_dimension_numbers<[1], [0], [0], [1], [0, 0, 1, 1], [], []>} : vector<16x128xbf16>, vector<128x128xbf16>, vector<16x128xf32> -> vector<16x128xf32>
    %207 = vector.extract_strided_slice %124 {offsets = [5, 0], sizes = [1, 128], strides = [1, 1]} : vector<10x128xf32> to vector<1x128xf32>
    %208 = vector.broadcast %207 : vector<1x128xf32> to vector<16x128xf32>
    %209 = arith.addf %206, %208 : vector<16x128xf32>
    %210 = arith.addf %197, %209 : vector<16x128xf32>
    %211 = vector.extract_strided_slice %124 {offsets = [8, 0], sizes = [1, 128], strides = [1, 1]} : vector<10x128xf32> to vector<1x128xf32>
    %212 = vector.extract_strided_slice %124 {offsets = [9, 0], sizes = [1, 128], strides = [1, 1]} : vector<10x128xf32> to vector<1x128xf32>
    %213 = vector.broadcast %4 : vector<1x128xf32> to vector<16x128xf32>
    %214 = arith.mulf %210, %213 : vector<16x128xf32>
    %cst_64 = arith.constant dense<0.000000e+00> : vector<16xf32>
    %215 = vector.multi_reduction <add>, %214, %cst_64 [1] : vector<16x128xf32> to vector<16xf32>
    %216 = vector.shape_cast %215 : vector<16xf32> to vector<16x1xf32>
    %cst_65 = arith.constant 0.020833334 : f32
    %217 = vector.broadcast %cst_65 : f32 to vector<16x1xf32>
    %218 = arith.mulf %216, %217 : vector<16x1xf32>
    %219 = vector.broadcast %218 : vector<16x1xf32> to vector<16x128xf32>
    %220 = arith.subf %210, %219 : vector<16x128xf32>
    %221 = vector.broadcast %4 : vector<1x128xf32> to vector<16x128xf32>
    %222 = arith.mulf %220, %221 : vector<16x128xf32>
    %223 = arith.mulf %222, %222 : vector<16x128xf32>
    %cst_66 = arith.constant dense<0.000000e+00> : vector<16xf32>
    %224 = vector.multi_reduction <add>, %223, %cst_66 [1] : vector<16x128xf32> to vector<16xf32>
    %225 = vector.shape_cast %224 : vector<16xf32> to vector<16x1xf32>
    %cst_67 = arith.constant 0.020833334 : f32
    %226 = vector.broadcast %cst_67 : f32 to vector<16x1xf32>
    %227 = arith.mulf %225, %226 : vector<16x1xf32>
    %cst_68 = arith.constant 9.99999974E-6 : f32
    %228 = vector.broadcast %cst_68 : f32 to vector<16x1xf32>
    %229 = arith.addf %227, %228 : vector<16x1xf32>
    %230 = math.rsqrt %229 : vector<16x1xf32>
    %231 = vector.broadcast %230 : vector<16x1xf32> to vector<16x128xf32>
    %232 = arith.mulf %222, %231 : vector<16x128xf32>
    %233 = vector.broadcast %211 : vector<1x128xf32> to vector<16x128xf32>
    %234 = arith.mulf %232, %233 : vector<16x128xf32>
    %235 = vector.broadcast %212 : vector<1x128xf32> to vector<16x128xf32>
    %236 = arith.addf %234, %235 : vector<16x128xf32>
    %c0_69 = arith.constant 0 : index
    %c0_70 = arith.constant 0 : index
    %237 = vector.load %arg5[%c0_69, %c0_70] : memref<16x128xf32, #tpu.memory_space<vmem>>, vector<16x128xf32>
    tpu.vector_store %arg5[%c0_69, %c0_70], %236 {strides = array<i32>} : memref<16x128xf32, #tpu.memory_space<vmem>>, vector<16x128xf32>,
    return
  }
  func.func @transform_0(%arg0: i32) -> (i32, i32) {
    %c0_i32 = arith.constant 0 : i32
    %c0_i32_0 = arith.constant 0 : i32
    return %arg0, %c0_i32 : i32, i32
  }
  func.func @transform_1(%arg0: i32) -> (i32, i32, i32) {
    %c0_i32 = arith.constant 0 : i32
    %c0_i32_0 = arith.constant 0 : i32
    %c0_i32_1 = arith.constant 0 : i32
    return %arg0, %c0_i32, %c0_i32_0 : i32, i32, i32
  }
  func.func @transform_2(%arg0: i32) -> (i32, i32, i32) {
    %c0_i32 = arith.constant 0 : i32
    %c0_i32_0 = arith.constant 0 : i32
    %c0_i32_1 = arith.constant 0 : i32
    %c0_i32_2 = arith.constant 0 : i32
    return %c0_i32, %c0_i32_0, %c0_i32_1 : i32, i32, i32
  }
  func.func @transform_3(%arg0: i32) -> (i32, i32, i32) {
    %c0_i32 = arith.constant 0 : i32
    %c0_i32_0 = arith.constant 0 : i32
    %c0_i32_1 = arith.constant 0 : i32
    %c0_i32_2 = arith.constant 0 : i32
    return %c0_i32, %c0_i32_0, %c0_i32_1 : i32, i32, i32
  }
  func.func @transform_4(%arg0: i32) -> (i32, i32) {
    %c0_i32 = arith.constant 0 : i32
    %c0_i32_0 = arith.constant 0 : i32
    return %arg0, %c0_i32 : i32, i32
  }
}

</mosaic_0001>

<bundles_post_ra>
// kernel: tpu_custom_call.1
= control target key start
LH: loop header
LB: loop body
LE: loop exit
PB: predicated region body
PF: predicated region fallthrough
CT: control target
= control target key end

     0   :  { %9 = vsyncpa [#allocation3], 0  ;;  %s2571_s0 = inlined_call_operand.hbm [shape: f32[16,128], index: 0, kind: input, shape index: {}, may-alias: {0,4}]   ;;  %s2572_s1 = inlined_call_operand.vmem [shape: bf16[1,16,16], index: 1, kind: input, shape index: {}]   ;;  %s2573_s2 = inlined_call_operand.hbm [shape: bf16[2,128,768], index: 2, kind: input, shape index: {}]   ;;  %s2574_s3 = inlined_call_operand.vmem [shape: f32[2,10,128], index: 3, kind: input, shape index: {}]   ;;  %s2575_s4 = inlined_call_operand.hbm [shape: f32[16,128], index: 4, kind: output, shape index: {}, may-alias: {0,4}]  }
   0x1   :  { %10 = vsyncpa [#allocation6], 0 }
   0x2   :  { %11 = vsyncpa [#allocation4], 0  ;;  %s2260_s15 = smov [#allocation2]   ;;  %s2188_s19 = scalar_lea.hbm %s2571_s0, 256 }
   0x3   :  { %s17_s16 = sshll.u32 %s2260_s15, 4  ;;  %p2189_p0 = scmp.ne.s32.totalorder %s2571_s0, %s2188_s19  ;;  %s18_s16 = int_to_ptr.vmem [resolvable:$true] %s17_s16 }
   0x4   :  { %p2192_p1 = scmp.lt.u32.totalorder %s2188_s19, %s2571_s0 }
   0x6   :  { %p2194_p2 = pnand %p2192_p1, %p2189_p0 }
   0x8   :  { %2197 = shalt.err (!%p2194_p2)
}
   0x9   :  { %s2198_s24 = scalar_lea.vmem %s18_s16, 256  ;;  %p2203_p4 = scmp.lt.s32.totalorder %s18_s16, %s18_s16 }
   0xa   :  { %p2199_p3 = scmp.ne.s32.totalorder %s18_s16, %s2198_s24  ;;  %p2204_p5 = scmp.lt.s32.totalorder %s2198_s24, %s2198_s24 }
   0xc   :  { %p2205_p6 = por %p2204_p5, %p2203_p4 }
   0xe   :  { %p2206_p7 = pnand %p2205_p6, %p2199_p3 }
  0x10   :  { %2209 = shalt.err (!%p2206_p7)
}
  0x11   :  { %s2261_s25 = smov 128   ;;  %s2262_s26 = smov 8  }
  0x12   :  { %23 = dma.hbm_to_vmem [thread:$0]  %s2571_s0, 256, %s18_s16, [#allocation3], %s2261_s25, %s2261_s25, %s2262_s26  }
  0x13   :  { %s2263_s29 = smov [#allocation5]   ;;  %s2210_s7 = scalar_lea.hbm %s2573_s2, 12288 }
  0x14   :  { %s31_s30 = sshll.u32 %s2263_s29, 4  ;;  %p2211_p8 = scmp.ne.s32.totalorder %s2573_s2, %s2210_s7  ;;  %s32_s30 = int_to_ptr.vmem [resolvable:$true] %s31_s30 }
  0x15   :  { %p2214_p9 = scmp.lt.u32.totalorder %s2210_s7, %s2573_s2 }
  0x17   :  { %p2216_p10 = pnand %p2214_p9, %p2211_p8 }
  0x19   :  { %2219 = shalt.err (!%p2216_p10)
}
  0x1a   :  { %s2220_s12 = scalar_lea.vmem %s32_s30, 12288  ;;  %p2225_p12 = scmp.lt.s32.totalorder %s32_s30, %s32_s30 }
  0x1b   :  { %p2221_p11 = scmp.ne.s32.totalorder %s32_s30, %s2220_s12  ;;  %p2226_p13 = scmp.lt.s32.totalorder %s2220_s12, %s2220_s12 }
  0x1d   :  { %p2227_p0 = por %p2226_p13, %p2225_p12 }
  0x1f   :  { %p2228_p1 = pnand %p2227_p0, %p2221_p11 }
  0x21   :  { %2231 = shalt.err (!%p2228_p1)
}
  0x22   :  { %s2264_s0 = smov 384   ;;  %s2265_s13 = smov 24  }
  0x23   :  { %37 = dma.hbm_to_vmem [thread:$0]  %s2573_s2, 12288, %s32_s30, [#allocation6], %s2264_s0, %s2264_s0, %s2265_s13  }
  0x24   :  { %2254 = dma.done.wait [#allocation3], 256  }
  0x25   :  { %2255 = vsyncadd [#allocation3], 4294967040 }
  0x26   :  { %2256 = dma.done.wait [#allocation6], 12288  }
  0x27   :  { %2257 = vsyncadd [#allocation6], 4294955008  ;;  %v2266_v0 = vmov 0   ;;  %v2267_v1 = vmov 0.0   ;;  %v2044_v2 = vld [vmem:[#allocation5 + $0x4] ss:$24 sps:$4 sm:$0xff]   ;;  %v47_v21 = vlaneseq }
  0x28   :  { %301 = vmatprep.mubr.bf16.mxu0 %v2266_v0  ;;  %1850 = vmatprep.subr.bf16.mxu1 %v2267_v1  ;;  %v2046_v3 = vld [vmem:[#allocation5] ss:$24 sps:$4 sm:$0xff]   ;;  %v2047_v4 = vld [vmem:[#allocation5 + $0x34] ss:$24 sps:$4 sm:$0xff]   ;;  %v2049_v5 = vld [vmem:[#allocation5 + $0x30] ss:$24 sps:$4 sm:$0xff]  }
  0x29   :  { %269 = vmatprep.subr.bf16.mxu0 %v2044_v2  ;;  %v2050_v6 = vld [vmem:[#allocation5 + $0x64] ss:$24 sps:$4 sm:$0xff]   ;;  %v2052_v7 = vld [vmem:[#allocation5 + $0x60] ss:$24 sps:$4 sm:$0xff]   ;;  %v2053_v8 = vld [vmem:[#allocation5 + $0x94] ss:$24 sps:$4 sm:$0xff]  }
  0x2a   :  { %270 = vmatpush1.bf16.msra.mxu0 %v2046_v3  ;;  %v2055_v9 = vld [vmem:[#allocation5 + $0x90] ss:$24 sps:$4 sm:$0xff]   ;;  %v2056_v10 = vld [vmem:[#allocation5 + $0xc4] ss:$24 sps:$4 sm:$0xff]   ;;  %v2058_v11 = vld [vmem:[#allocation5 + $0xc0] ss:$24 sps:$4 sm:$0xff]  }
  0x2b   :  { %271 = vmatprep.subr.bf16.mxu0 %v2047_v4  ;;  %v2059_v12 = vld [vmem:[#allocation5 + $0xf4] ss:$24 sps:$4 sm:$0xff]   ;;  %v2061_v13 = vld [vmem:[#allocation5 + $0xf0] ss:$24 sps:$4 sm:$0xff]   ;;  %v2062_v14 = vld [vmem:[#allocation5 + $0x124] ss:$24 sps:$4 sm:$0xff]  }
  0x2c   :  { %v2064_v15 = vld [vmem:[#allocation5 + $0x120] ss:$24 sps:$4 sm:$0xff]   ;;  %v2065_v16 = vld [vmem:[#allocation5 + $0x154] ss:$24 sps:$4 sm:$0xff]   ;;  %v2067_v17 = vld [vmem:[#allocation5 + $0x150] ss:$24 sps:$4 sm:$0xff]  }
  0x2d   :  { %v2324_v18 = vld [vmem:[#allocation2] sm:$0xff]  ;;  %v2326_v19 = vld [vmem:[#allocation2 + $0x8] sm:$0xff]  ;;  %vm2268_vm0 = vmmov 0   ;;  %v2336_v22 = vshrl.u32 %v47_v21, 7  ;;  %v2068_v38 = vld [vmem:[#allocation5 + $0x8] ss:$24 sps:$4 sm:$0xff]  }
  0x2e   :  { %272 = vmatpush1.bf16.msra.mxu0 %v2049_v5  ;;  %v140_v20 = vpack.c.bf16 %v2326_v19, %v2324_v18  ;;  %1866 = vmatprep.mubr.msk.bf16.mxu1 %vm2268_vm0, %v2267_v1  ;;  %v2344_v24 = vld [vmem:[%s2574_s3] sm:$0xff]  ;;  %v2070_v40 = vld [vmem:[#allocation5 + $0x68] ss:$24 sps:$4 sm:$0xff]   ;;  %vm418_vm1 = vcmask 130048   ;;  %s2269_s24 = smov [#allocation7]  }
  0x2f   :  { %273 = vmatprep.subr.bf16.mxu0 %v2050_v6  ;;  %v2339_v23 = vsub.s32 0, %v2336_v22  ;;  %v2347_v25 = vsub.s32 1, %v2336_v22  ;;  %1851 = vmatpush3.bf16.msra.mxu1 %v2068_v38  ;;  %v2069_v39 = vld [vmem:[#allocation5 + $0x38] ss:$24 sps:$4 sm:$0xff]   ;;  %v2072_v42 = vld [vmem:[#allocation5 + $0xc8] ss:$24 sps:$4 sm:$0xff]  }
  0x30   :  { %1852 = vmatprep.subr.bf16.mxu1 %v2267_v1  ;;  %v2071_v41 = vld [vmem:[#allocation5 + $0x98] ss:$24 sps:$4 sm:$0xff]   ;;  %v2074_v44 = vld [vmem:[#allocation5 + $0x128] ss:$24 sps:$4 sm:$0xff]   ;;  %s1652_s27 = sshll.u32 %s2269_s24, 4  ;;  %s1653_s27 = int_to_ptr.vmem [resolvable:$true] %s1652_s27 }
  0x31   :  { %v356_v26 = vrot.slane %v2344_v24, %v2339_v23  ;;  %v362_v28 = vrot.slane %v2344_v24, %v2347_v25  ;;  %v2073_v43 = vld [vmem:[#allocation5 + $0xf8] ss:$24 sps:$4 sm:$0xff]   ;;  %s2232_s28 = scalar_lea.vmem %s1653_s27, 256  ;;  %p2237_p3 = scmp.lt.s32.totalorder %s1653_s27, %s1653_s27 }
  0x32   :  { %274 = vmatpush1.bf16.msra.mxu0 %v2052_v7  ;;  %v2075_v45 = vld [vmem:[#allocation5 + $0x158] ss:$24 sps:$4 sm:$0xff]   ;;  %p2233_p2 = scmp.ne.s32.totalorder %s1653_s27, %s2232_s28  ;;  %p2238_p4 = scmp.lt.s32.totalorder %s2232_s28, %s2232_s28 }
  0x33   :  { %275 = vmatprep.subr.bf16.mxu0 %v2053_v8  ;;  %1853 = vmatpush3.bf16.msra.mxu1 %v2069_v39  ;;  %v2369_v46 = vld [vmem:[%s2572_s1] sm:$0xff]   ;;  %v367_v8 = vsub.s32 2, %v2336_v22 }
  0x34   :  { %1854 = vmatprep.subr.bf16.mxu1 %v2267_v1  ;;  %v1768_v47 = vunpack.c.l.bf16 %v2369_v46  ;;  %v1769_v51 = vunpack.c.h.bf16 %v2369_v46  ;;  %p2239_p5 = por %p2238_p4, %p2237_p3 }
  0x36   :  { %276 = vmatpush1.bf16.msra.mxu0 %v2055_v9  ;;  %p2240_p6 = pnand %p2239_p5, %p2233_p2 }
  0x37   :  { %277 = vmatprep.subr.bf16.mxu0 %v2056_v10  ;;  %1855 = vmatpush3.bf16.msra.mxu1 %v2070_v40  ;;  %v368_v10 = vrot.slane %v2344_v24, %v367_v8 }
  0x38   :  { %1856 = vmatprep.subr.bf16.mxu1 %v2267_v1 }
  0x3a   :  { %278 = vmatpush1.bf16.msra.mxu0 %v2058_v11 }
  0x3b   :  { %279 = vmatprep.subr.bf16.mxu0 %v2059_v12  ;;  %1857 = vmatpush3.bf16.msra.mxu1 %v2071_v41 }
  0x3c   :  { %1858 = vmatprep.subr.bf16.mxu1 %v2267_v1 }
  0x3e   :  { %280 = vmatpush1.bf16.msra.mxu0 %v2061_v13 }
  0x3f   :  { %281 = vmatprep.subr.bf16.mxu0 %v2062_v14  ;;  %1859 = vmatpush3.bf16.msra.mxu1 %v2072_v42 }
  0x40   :  { %1860 = vmatprep.subr.bf16.mxu1 %v2267_v1 }
  0x42   :  { %282 = vmatpush1.bf16.msra.mxu0 %v2064_v15 }
  0x43   :  { %283 = vmatprep.subr.bf16.mxu0 %v2065_v16  ;;  %1861 = vmatpush3.bf16.msra.mxu1 %v2073_v43  ;;  %v490_v43 = vsub.s32 3, %v2336_v22 }
  0x44   :  { %1862 = vmatprep.subr.bf16.mxu1 %v2267_v1 }
  0x46   :  { %284 = vmatpush1.bf16.msra.mxu0 %v2067_v17 }
  0x47   :  { %1870 = vmatprep.subr.bf16.mxu0 %v2267_v1  ;;  %1863 = vmatpush3.bf16.msra.mxu1 %v2074_v44  ;;  %v48_v44 = vand.u32 127, %v47_v21 }
  0x48   :  { %1864 = vmatprep.subr.bf16.mxu1 %v2267_v1 }
  0x49   :  { %302 = vmatmul.mubr.bf16.vlgmr.msra.gmra.mrb[0].mxu0 %v140_v20  ;;  %vm49_vm2 = vcmp.lt.s32.totalorder %v48_v44, 48 }
  0x4a   :  { %1872 = vmatprep.mubr.msk.bf16.mxu0 %vm2268_vm0, %v2267_v1 }
  0x4b   :  { %1865 = vmatpush3.bf16.msra.mxu1 %v2075_v45  ;;  %v491_v45 = vrot.slane %v2344_v24, %v490_v43 }
  0x4c   :  { %1902 = vmatprep.subr.bf16.mxu1 %v2267_v1 }
  0x4e   :  { %1867 = vmatmul.mubr.bf16.vlgmr.msra.gmra.mrb[0].mxu1 %v140_v20 }
  0x4f   :  { %1918 = vmatprep.mubr.msk.bf16.mxu1 %vm2268_vm0, %v2267_v1 }
 0x11c   :  { %v303_v27 = vpop.f32.mrb[0].mxu0 }
 0x11d   :  { %v305_v29 = vpop.f32.mrb[1].mxu0  ;;  %v357_v31 = vadd.f32 %v356_v26, %v303_v27 }
 0x11e   :  { %v307_v30 = vpop.f32.mrb[2].mxu0  ;;  %v363_v34 = vadd.f32 %v362_v28, %v305_v29  ;;  %v2076_v29 = vld [vmem:[#allocation5 + $0xc] ss:$24 sps:$4 sm:$0xff]  }
 0x11f   :  { %v358_v32 = vadd.f32 %v356_v26, %v307_v30  ;;  %v309_v33 = vpop.f32.mrb[3].mxu0 }
 0x120   :  { %v364_v35 = vadd.f32 %v362_v28, %v309_v33  ;;  %v2079_v33 = vld [vmem:[#allocation5 + $0x9c] ss:$24 sps:$4 sm:$0xff]  }
 0x121   :  { %v371_v36 = vpack.c.bf16 %v358_v32, %v357_v31  ;;  %v346_v7 = vpop.f32.mrb[0].mxu1  ;;  %v2077_v31 = vld [vmem:[#allocation5 + $0x3c] ss:$24 sps:$4 sm:$0xff]   ;;  %v2078_v32 = vld [vmem:[#allocation5 + $0x6c] ss:$24 sps:$4 sm:$0xff]  }
 0x122   :  { %v372_v37 = vpack.c.bf16 %v364_v35, %v363_v34  ;;  %v1868_v9 = vpop.f32.mrb[1].mxu1  ;;  %v369_v13 = vadd.f32 %v368_v10, %v346_v7  ;;  %v2080_v34 = vld [vmem:[#allocation5 + $0xcc] ss:$24 sps:$4 sm:$0xff]   ;;  %v2081_v35 = vld [vmem:[#allocation5 + $0xfc] ss:$24 sps:$4 sm:$0xff]  }
 0x123   :  { %v349_v11 = vpop.f32.mrb[2].mxu1  ;;  %v2086_v7 = vld [vmem:[#allocation5 + $0x70] ss:$24 sps:$4 sm:$0xff]   ;;  %v2087_v9 = vld [vmem:[#allocation5 + $0xa0] ss:$24 sps:$4 sm:$0xff]  }
 0x124   :  { %1871 = vmatpush3.bf16.xpose.msra.mxu0 %v372_v37  ;;  %v1869_v12 = vpop.f32.mrb[3].mxu1  ;;  %v370_v14 = vadd.f32 %v368_v10, %v349_v11  ;;  %v2083_v37 = vld [vmem:[#allocation5 + $0x15c] ss:$24 sps:$4 sm:$0xff]   ;;  %v2088_v10 = vld [vmem:[#allocation5 + $0xd0] ss:$24 sps:$4 sm:$0xff]  }
 0x125   :  { %1876 = vmatprep.subr.bf16.mxu0 %v2267_v1  ;;  %v2089_v11 = vld [vmem:[#allocation5 + $0x100] ss:$24 sps:$4 sm:$0xff]   ;;  %v2090_v12 = vld [vmem:[#allocation5 + $0x130] ss:$24 sps:$4 sm:$0xff]  }
 0x126   :  { %v441_v15 = vpack.c.bf16 %v370_v14, %v369_v13  ;;  %v2091_v13 = vld [vmem:[#allocation5 + $0x160] ss:$24 sps:$4 sm:$0xff]   ;;  %v2092_v14 = vld [vmem:[#allocation5 + $0x14] ss:$24 sps:$4 sm:$0xff]  }
 0x12b   :  { %1873 = vmatmul.mubr.bf16.vlgmr.msra.gmra.mrb[4].mxu0 %v371_v36  ;;  %v2082_v36 = vld [vmem:[#allocation5 + $0x12c] ss:$24 sps:$4 sm:$0xff]  }
 0x12c   :  { %1878 = vmatprep.mubr.msk.bf16.mxu0 %vm2268_vm0, %v2267_v1  ;;  %1877 = vmatpush3.bf16.msra.mxu0 %v441_v15  ;;  %v2093_v15 = vld [vmem:[#allocation5 + $0x44] ss:$24 sps:$4 sm:$0xff]  }
 0x12d   :  { %1882 = vmatprep.subr.bf16.mxu0 %v2267_v1 }
 0x1fe   :  { %v407_v48 = vpop.f32.mrb[4].mxu0 }
 0x1ff   :  { %v414_v49 = vmul.f32 0.14433756, %v407_v48  ;;  %v1874_v50 = vpop.f32.mrb[5].mxu0 }
 0x200   :  { %v410_v52 = vpop.f32.mrb[6].mxu0 }
 0x201   :  { %v415_v53 = vmul.f32 0.14433756, %v410_v52  ;;  %v1875_v54 = vpop.f32.mrb[7].mxu0  ;;  %v416_v55 = vadd.f32 %v1768_v47, %v414_v49  ;;  %v2405_v52 = vsel %vm49_vm2, 1.0, %v2267_v1 }
 0x203   :  { %v419_v56 = vsel %vm418_vm1, %v416_v55, -inf  ;;  %v417_v57 = vadd.f32 %v1769_v51, %v415_v53 }
 0x204   :  { %420 = vmax.xlane.f32.xlu0 %v419_v56 }
 0x205   :  { %v422_v58 = vsel %vm418_vm1, %v417_v57, -inf }
 0x208   :  { %423 = vmax.xlane.f32.xlu0 %v422_v58 }
 0x291   :  { %v421_v59 = vpop.xlane.xlu0 %420 }
 0x292   :  { %v425_v60 = vsub.f32 %v416_v55, %v421_v59  ;;  %v2084_v59 = vld [vmem:[#allocation5 + $0x10] ss:$24 sps:$4 sm:$0xff]  }
 0x293   :  { %1903 = vmatpush3.bf16.msra.mxu1 %v2084_v59 }
 0x294   :  { %v427_v61 = vmul.f32 1.442695, %v425_v60  ;;  %v2085_v60 = vld [vmem:[#allocation5 + $0x40] ss:$24 sps:$4 sm:$0xff]   ;;  %1904 = vmatprep.subr.bf16.mxu1 %v2267_v1 }
 0x295   :  { %v424_v62 = vpop.xlane.xlu0 %423 }
 0x296   :  { %2156 = vpow2.f32 %v427_v61  ;;  %v426_v63 = vsub.f32 %v417_v57, %v424_v62 }
 0x297   :  { %1905 = vmatpush3.bf16.msra.mxu1 %v2085_v60 }
 0x298   :  { %v429_v2 = vmul.f32 1.442695, %v426_v63  ;;  %1906 = vmatprep.subr.bf16.mxu1 %v2267_v1 }
 0x29a   :  { %2158 = vpow2.f32 %v429_v2 }
 0x29b   :  { %1907 = vmatpush3.bf16.msra.mxu1 %v2086_v7 }
 0x29c   :  { %1908 = vmatprep.subr.bf16.mxu1 %v2267_v1 }
 0x29f   :  { %1909 = vmatpush3.bf16.msra.mxu1 %v2087_v9 }
 0x2a0   :  { %v2157_v3 = vpop.eup %2156  ;;  %1910 = vmatprep.subr.bf16.mxu1 %v2267_v1 }
 0x2a1   :  { %v431_v4 = vsel %vm418_vm1, %v2157_v3, 0.0 }
 0x2a2   :  { %432 = vadd.xlane.f32.xlu1 %v431_v4 }
 0x2a3   :  { %1911 = vmatpush3.bf16.msra.mxu1 %v2088_v10 }
 0x2a4   :  { %v2159_v5 = vpop.eup %2158  ;;  %1912 = vmatprep.subr.bf16.mxu1 %v2267_v1 }
 0x2a5   :  { %v434_v6 = vsel %vm418_vm1, %v2159_v5, 0.0 }
 0x2a6   :  { %435 = vadd.xlane.f32.xlu1 %v434_v6 }
 0x2a7   :  { %1913 = vmatpush3.bf16.msra.mxu1 %v2089_v11  ;;  %v2100_v11 = vld [vmem:[#allocation5 + $0x180] ss:$24 sps:$4 sm:$0xff]  }
 0x2a8   :  { %1914 = vmatprep.subr.bf16.mxu1 %v2267_v1 }
 0x2ab   :  { %1915 = vmatpush3.bf16.msra.mxu1 %v2090_v12  ;;  %v2102_v12 = vld [vmem:[#allocation5 + $0x184] ss:$24 sps:$4 sm:$0xff]  }
 0x2ac   :  { %1916 = vmatprep.subr.bf16.mxu1 %v2267_v1 }
 0x2af   :  { %1917 = vmatpush3.bf16.msra.mxu1 %v2091_v13  ;;  %v2103_v13 = vld [vmem:[#allocation5 + $0x188] ss:$24 sps:$4 sm:$0xff]  }
 0x2b0   :  { %1064 = vmatprep.subr.bf16.mxu1 %v2102_v12 }
 0x32f   :  { %v433_v16 = vpop.xlane.xlu1 %432 }
 0x330   :  { %2160 = vrcp.f32 %v433_v16  ;;  %v2094_v16 = vld [vmem:[#allocation5 + $0x74] ss:$24 sps:$4 sm:$0xff]  }
 0x333   :  { %v436_v17 = vpop.xlane.xlu1 %435 }
 0x334   :  { %2162 = vrcp.f32 %v436_v17  ;;  %v2095_v17 = vld [vmem:[#allocation5 + $0xa4] ss:$24 sps:$4 sm:$0xff]  }
 0x33a   :  { %v2161_v20 = vpop.eup %2160 }
 0x33b   :  { %v439_v27 = vmul.f32 %v2161_v20, %v2157_v3  ;;  %v2096_v20 = vld [vmem:[#allocation5 + $0xd4] ss:$24 sps:$4 sm:$0xff]  }
 0x33e   :  { %v2163_v26 = vpop.eup %2162 }
 0x33f   :  { %v440_v28 = vmul.f32 %v2163_v26, %v2159_v5  ;;  %v2097_v26 = vld [vmem:[#allocation5 + $0x104] ss:$24 sps:$4 sm:$0xff]  }
 0x341   :  { %v442_v30 = vpack.c.bf16 %v440_v28, %v439_v27 }
 0x343   :  { %1879 = vmatmul.mubr.msk.bf16.vlgmr.msra.gmra.mrb[8].mxu0 %vm418_vm1, %v442_v30 }
 0x344   :  { %1883 = vmatpush3.bf16.msra.mxu0 %v2076_v29  ;;  %1898 = vmatprep.mubr.msk.bf16.mxu0 %vm2268_vm0, %v2267_v1 }
 0x345   :  { %1884 = vmatprep.subr.bf16.mxu0 %v2267_v1 }
 0x348   :  { %1885 = vmatpush3.bf16.msra.mxu0 %v2077_v31 }
 0x349   :  { %1886 = vmatprep.subr.bf16.mxu0 %v2267_v1 }
 0x34c   :  { %1887 = vmatpush3.bf16.msra.mxu0 %v2078_v32 }
 0x34d   :  { %1888 = vmatprep.subr.bf16.mxu0 %v2267_v1 }
 0x350   :  { %1889 = vmatpush3.bf16.msra.mxu0 %v2079_v33  ;;  %v611_v33 = vsub.s32 6, %v2336_v22 }
 0x351   :  { %1890 = vmatprep.subr.bf16.mxu0 %v2267_v1 }
 0x354   :  { %1891 = vmatpush3.bf16.msra.mxu0 %v2080_v34  ;;  %v612_v34 = vrot.slane %v2344_v24, %v611_v33 }
 0x355   :  { %1892 = vmatprep.subr.bf16.mxu0 %v2267_v1 }
 0x358   :  { %1893 = vmatpush3.bf16.msra.mxu0 %v2081_v35  ;;  %v617_v35 = vsub.s32 7, %v2336_v22 }
 0x359   :  { %1894 = vmatprep.subr.bf16.mxu0 %v2267_v1 }
 0x35c   :  { %1895 = vmatpush3.bf16.msra.mxu0 %v2082_v36 }
 0x35d   :  { %1896 = vmatprep.subr.bf16.mxu0 %v2267_v1 }
 0x360   :  { %1897 = vmatpush3.bf16.msra.mxu0 %v2083_v37 }
 0x361   :  { %1922 = vmatprep.subr.bf16.mxu0 %v2267_v1 }
 0x416   :  { %v480_v38 = vpop.f32.mrb[8].mxu0 }
 0x417   :  { %v1880_v39 = vpop.f32.mrb[9].mxu0 }
 0x418   :  { %v483_v40 = vpop.f32.mrb[10].mxu0 }
 0x419   :  { %v487_v41 = vpack.c.bf16 %v483_v40, %v480_v38  ;;  %v1881_v42 = vpop.f32.mrb[11].mxu0 }
 0x41b   :  { %1899 = vmatmul.mubr.bf16.vlgmr.msra.gmra.mrb[12].mxu0 %v487_v41  ;;  %v618_v41 = vrot.slane %v2344_v24, %v617_v35 }
 0x41c   :  { %1938 = vmatprep.mubr.msk.bf16.mxu0 %vm2268_vm0, %v2267_v1  ;;  %1923 = vmatpush3.bf16.msra.mxu0 %v2092_v14  ;;  %v2106_v14 = vld [vmem:[#allocation5 + $0x1b4] ss:$24 sps:$4 sm:$0xff]  }
 0x41d   :  { %1924 = vmatprep.subr.bf16.mxu0 %v2267_v1 }
 0x420   :  { %1925 = vmatpush3.bf16.msra.mxu0 %v2093_v15  ;;  %v2104_v15 = vld [vmem:[#allocation5 + $0x1b0] ss:$24 sps:$4 sm:$0xff]  }
 0x421   :  { %1926 = vmatprep.subr.bf16.mxu0 %v2267_v1 }
 0x424   :  { %1927 = vmatpush3.bf16.msra.mxu0 %v2094_v16 }
 0x425   :  { %1928 = vmatprep.subr.bf16.mxu0 %v2267_v1 }
 0x428   :  { %1929 = vmatpush3.bf16.msra.mxu0 %v2095_v17 }
 0x429   :  { %1930 = vmatprep.subr.bf16.mxu0 %v2267_v1 }
 0x42c   :  { %1931 = vmatpush3.bf16.msra.mxu0 %v2096_v20 }
 0x42d   :  { %1932 = vmatprep.subr.bf16.mxu0 %v2267_v1 }
 0x430   :  { %1933 = vmatpush3.bf16.msra.mxu0 %v2097_v26 }
 0x431   :  { %1934 = vmatprep.subr.bf16.mxu0 %v2267_v1 }
 0x4ee   :  { %v574_v48 = vpop.f32.mrb[12].mxu0 }
 0x4ef   :  { %v575_v49 = vadd.f32 %v574_v48, %v491_v45  ;;  %v1900_v50 = vpop.f32.mrb[13].mxu0 }
 0x4f0   :  { %v577_v53 = vpop.f32.mrb[14].mxu0  ;;  %v2099_v50 = vld [vmem:[#allocation5 + $0x164] ss:$24 sps:$4 sm:$0xff]  }
 0x4f1   :  { %v581_v54 = vadd.f32 %v575_v49, %v2324_v18  ;;  %v578_v55 = vadd.f32 %v577_v53, %v491_v45  ;;  %v1901_v56 = vpop.f32.mrb[15].mxu0  ;;  %v2098_v49 = vld [vmem:[#allocation5 + $0x134] ss:$24 sps:$4 sm:$0xff]   ;;  %v624_v53 = vsub.s32 4, %v2336_v22 }
 0x4f2   :  { %1935 = vmatpush3.bf16.msra.mxu0 %v2098_v49  ;;  %v2123_v49 = vld [vmem:[#allocation5 + $0x278] ss:$24 sps:$4 sm:$0xff]  }
 0x4f3   :  { %v582_v57 = vadd.f32 %v578_v55, %v2326_v19  ;;  %v583_v21 = vmul.f32 %v2405_v52, %v581_v54  ;;  %1936 = vmatprep.subr.bf16.mxu0 %v2267_v1 }
 0x4f5   :  { %585 = vadd.xlane.f32.xlu0 %v583_v21  ;;  %v584_v58 = vmul.f32 %v2405_v52, %v582_v57 }
 0x4f6   :  { %1937 = vmatpush3.bf16.msra.mxu0 %v2099_v50  ;;  %v2126_v50 = vld [vmem:[#allocation5 + $0x2a4] ss:$24 sps:$4 sm:$0xff]  }
 0x4f7   :  { %587 = vadd.xlane.f32.xlu1 %v584_v58  ;;  %1942 = vmatprep.subr.bf16.mxu0 %v2267_v1 }
 0x582   :  { %v586_v61 = vpop.xlane.xlu0 %585 }
 0x583   :  { %v589_v18 = vmul.f32 0.020833334, %v586_v61 }
 0x584   :  { %v588_v62 = vpop.xlane.xlu1 %587 }
 0x585   :  { %v591_v63 = vsub.f32 %v581_v54, %v589_v18  ;;  %v590_v2 = vmul.f32 0.020833334, %v588_v62  ;;  %v625_v54 = vrot.slane %v2344_v24, %v624_v53  ;;  %v720_v18 = vsub.s32 5, %v2336_v22 }
 0x587   :  { %v592_v19 = vsub.f32 %v582_v57, %v590_v2  ;;  %v593_v3 = vmul.f32 %v2405_v52, %v591_v63  ;;  %v721_v62 = vrot.slane %v2344_v24, %v720_v18  ;;  %v2107_v24 = vld [vmem:[#allocation5 + $0x1b8] ss:$24 sps:$4 sm:$0xff]  }
 0x589   :  { %v595_v4 = vmul.f32 %v593_v3, %v593_v3  ;;  %v594_v5 = vmul.f32 %v2405_v52, %v592_v19 }
 0x58b   :  { %597 = vadd.xlane.f32.xlu0 %v595_v4  ;;  %v596_v6 = vmul.f32 %v594_v5, %v594_v5 }
 0x58d   :  { %599 = vadd.xlane.f32.xlu1 %v596_v6 }
 0x618   :  { %v598_v27 = vpop.xlane.xlu0 %597 }
 0x619   :  { %v601_v28 = vmul.f32 0.020833334, %v598_v27 }
 0x61a   :  { %v600_v29 = vpop.xlane.xlu1 %599 }
 0x61b   :  { %v603_v30 = vadd.f32 1e-05, %v601_v28  ;;  %v602_v31 = vmul.f32 0.020833334, %v600_v29 }
 0x61d   :  { %2164 = vrsqrt.f32 %v603_v30  ;;  %v604_v32 = vadd.f32 1e-05, %v602_v31 }
 0x61f   :  { %2166 = vrsqrt.f32 %v604_v32 }
 0x627   :  { %v2165_v36 = vpop.eup %2164 }
 0x628   :  { %v607_v37 = vmul.f32 %v2165_v36, %v593_v3  ;;  %v2108_v36 = vld [vmem:[#allocation5 + $0x1e0] ss:$24 sps:$4 sm:$0xff]  }
 0x629   :  { %v2167_v38 = vpop.eup %2166 }
 0x62a   :  { %v608_v39 = vmul.f32 %v2167_v38, %v594_v5  ;;  %v613_v40 = vmul.f32 %v612_v34, %v607_v37  ;;  %v2111_v37 = vld [vmem:[#allocation5 + $0x1e8] ss:$24 sps:$4 sm:$0xff]   ;;  %v2114_v38 = vld [vmem:[#allocation5 + $0x214] ss:$24 sps:$4 sm:$0xff]  }
 0x62c   :  { %v614_v42 = vmul.f32 %v612_v34, %v608_v39  ;;  %v619_v44 = vadd.f32 %v618_v41, %v613_v40  ;;  %v2110_v34 = vld [vmem:[#allocation5 + $0x1e4] ss:$24 sps:$4 sm:$0xff]   ;;  %v2112_v39 = vld [vmem:[#allocation5 + $0x210] ss:$24 sps:$4 sm:$0xff]  }
 0x62d   :  { %v2115_v40 = vld [vmem:[#allocation5 + $0x218] ss:$24 sps:$4 sm:$0xff]  }
 0x62e   :  { %v620_v45 = vadd.f32 %v618_v41, %v614_v42  ;;  %v2118_v41 = vld [vmem:[#allocation5 + $0x244] ss:$24 sps:$4 sm:$0xff]   ;;  %v2116_v42 = vld [vmem:[#allocation5 + $0x240] ss:$24 sps:$4 sm:$0xff]  }
 0x630   :  { %v621_v48 = vpack.c.bf16 %v620_v45, %v619_v44 }
 0x632   :  { %1919 = vmatmul.mubr.bf16.vlgmr.msra.gmra.mrb[4].mxu1 %v621_v48  ;;  %v2120_v48 = vld [vmem:[#allocation5 + $0x270] ss:$24 sps:$4 sm:$0xff]  }
 0x633   :  { %1096 = vmatprep.mubr.bf16.mxu1 %v2266_v0  ;;  %1065 = vmatpush1.bf16.msra.mxu1 %v2100_v11 }
 0x634   :  { %1066 = vmatprep.subr.bf16.mxu1 %v2106_v14 }
 0x637   :  { %1067 = vmatpush1.bf16.msra.mxu1 %v2104_v15 }
 0x638   :  { %1068 = vmatprep.subr.bf16.mxu1 %v2110_v34 }
 0x63b   :  { %1069 = vmatpush1.bf16.msra.mxu1 %v2108_v36 }
 0x63c   :  { %1070 = vmatprep.subr.bf16.mxu1 %v2114_v38 }
 0x63f   :  { %1071 = vmatpush1.bf16.msra.mxu1 %v2112_v39 }
 0x640   :  { %1072 = vmatprep.subr.bf16.mxu1 %v2118_v41 }
 0x643   :  { %1073 = vmatpush1.bf16.msra.mxu1 %v2116_v42 }
 0x705   :  { %v708_v55 = vpop.f32.mrb[4].mxu1 }
 0x706   :  { %v709_v56 = vadd.f32 %v708_v55, %v625_v54  ;;  %v1920_v57 = vpop.f32.mrb[5].mxu1  ;;  %v2127_v55 = vld [vmem:[#allocation5 + $0x2a8] ss:$24 sps:$4 sm:$0xff]  }
 0x707   :  { %v711_v21 = vpop.f32.mrb[6].mxu1  ;;  %v2128_v57 = vld [vmem:[#allocation5 + $0x2d0] ss:$24 sps:$4 sm:$0xff]  }
 0x708   :  { %v712_v58 = vadd.f32 %v711_v21, %v625_v54  ;;  %v1921_v0 = vpop.f32.mrb[7].mxu1  ;;  %v715_v59 = vmax.f32 %v709_v56, 0.0  ;;  %v2124_v54 = vld [vmem:[#allocation5 + $0x2a0] ss:$24 sps:$4 sm:$0xff]   ;;  %v2130_v56 = vld [vmem:[#allocation5 + $0x2d4] ss:$24 sps:$4 sm:$0xff]  }
 0x709   :  { %v2131_v21 = vld [vmem:[#allocation5 + $0x2d8] ss:$24 sps:$4 sm:$0xff]  }
 0x70a   :  { %v716_v60 = vmax.f32 %v712_v58, 0.0 }
 0x70c   :  { %v717_v61 = vpack.c.bf16 %v716_v60, %v715_v59 }
 0x70e   :  { %1939 = vmatmul.mubr.bf16.vlgmr.msra.gmra.mrb[16].mxu0 %v717_v61 }
 0x70f   :  { %1958 = vmatprep.mubr.msk.bf16.mxu0 %vm2268_vm0, %v2267_v1  ;;  %1943 = vmatpush3.bf16.msra.mxu0 %v2103_v13  ;;  %v2478_v13 = vld [vmem:[%s2574_s3 + $0x10] sm:$0xff] }
 0x710   :  { %1944 = vmatprep.subr.bf16.mxu0 %v2267_v1  ;;  %v1151_v14 = vrot.slane %v2478_v13, %v2339_v23 }
 0x713   :  { %1945 = vmatpush3.bf16.msra.mxu0 %v2107_v24  ;;  %v1163_v24 = vrot.slane %v2478_v13, %v367_v8 }
 0x714   :  { %1946 = vmatprep.subr.bf16.mxu0 %v2267_v1 }
 0x717   :  { %1947 = vmatpush3.bf16.msra.mxu0 %v2111_v37 }
 0x718   :  { %1948 = vmatprep.subr.bf16.mxu0 %v2267_v1 }
 0x71b   :  { %1949 = vmatpush3.bf16.msra.mxu0 %v2115_v40 }
 0x71c   :  { %1950 = vmatprep.subr.bf16.mxu0 %v2267_v1 }
 0x7e1   :  { %v804_v63 = vpop.f32.mrb[16].mxu0 }
 0x7e2   :  { %v805_v2 = vadd.f32 %v804_v63, %v721_v62  ;;  %v1940_v19 = vpop.f32.mrb[17].mxu0  ;;  %v59_v63 = vld [vmem:[%s2574_s3 + $0x8] sm:$0x3] }
 0x7e3   :  { %v807_v3 = vpop.f32.mrb[18].mxu0 }
 0x7e4   :  { %v811_v4 = vadd.f32 %v805_v2, %v619_v44  ;;  %v808_v5 = vadd.f32 %v807_v3, %v721_v62  ;;  %v1941_v6 = vpop.f32.mrb[19].mxu0  ;;  %v2119_v44 = vld [vmem:[#allocation5 + $0x248] ss:$24 sps:$4 sm:$0xff]   ;;  %v842_v2 = vrot.slane %v59_v63, %v2339_v23 }
 0x7e5   :  { %1951 = vmatpush3.bf16.msra.mxu0 %v2119_v44 }
 0x7e6   :  { %v812_v7 = vadd.f32 %v808_v5, %v620_v45  ;;  %v813_v9 = vmul.f32 %v2405_v52, %v811_v4  ;;  %v2122_v45 = vld [vmem:[#allocation5 + $0x274] ss:$24 sps:$4 sm:$0xff]   ;;  %1952 = vmatprep.subr.bf16.mxu0 %v2267_v1 }
 0x7e7   :  { %1074 = vmatprep.subr.bf16.mxu1 %v2122_v45 }
 0x7e8   :  { %815 = vadd.xlane.f32.xlu0 %v813_v9  ;;  %v814_v10 = vmul.f32 %v2405_v52, %v812_v7  ;;  %1075 = vmatpush1.bf16.msra.mxu1 %v2120_v48 }
 0x7e9   :  { %1953 = vmatpush3.bf16.msra.mxu0 %v2123_v49  ;;  %1076 = vmatprep.subr.bf16.mxu1 %v2126_v50 }
 0x7ea   :  { %817 = vadd.xlane.f32.xlu1 %v814_v10  ;;  %1954 = vmatprep.subr.bf16.mxu0 %v2267_v1 }
 0x7ec   :  { %1077 = vmatpush1.bf16.msra.mxu1 %v2124_v54 }
 0x7ed   :  { %1955 = vmatpush3.bf16.msra.mxu0 %v2127_v55  ;;  %1078 = vmatprep.subr.bf16.mxu1 %v2130_v56 }
 0x7ee   :  { %1956 = vmatprep.subr.bf16.mxu0 %v2267_v1 }
 0x7f0   :  { %1079 = vmatpush1.bf16.msra.mxu1 %v2128_v57 }
 0x7f1   :  { %1957 = vmatpush3.bf16.msra.mxu0 %v2131_v21  ;;  %1962 = vmatprep.subr.bf16.mxu1 %v2267_v1 }
 0x7f2   :  { %1994 = vmatprep.subr.bf16.mxu0 %v2267_v1 }
 0x875   :  { %v816_v16 = vpop.xlane.xlu0 %815 }
 0x876   :  { %v819_v17 = vmul.f32 0.020833334, %v816_v16 }
 0x877   :  { %v818_v20 = vpop.xlane.xlu1 %817 }
 0x878   :  { %v821_v26 = vsub.f32 %v811_v4, %v819_v17  ;;  %v820_v27 = vmul.f32 0.020833334, %v818_v20  ;;  %v1157_v17 = vrot.slane %v2478_v13, %v2347_v25 }
 0x87a   :  { %v822_v28 = vsub.f32 %v812_v7, %v820_v27  ;;  %v823_v29 = vmul.f32 %v2405_v52, %v821_v26  ;;  %v848_v7 = vrot.slane %v59_v63, %v2347_v25 }
 0x87c   :  { %v825_v30 = vmul.f32 %v823_v29, %v823_v29  ;;  %v824_v31 = vmul.f32 %v2405_v52, %v822_v28 }
 0x87e   :  { %827 = vadd.xlane.f32.xlu0 %v825_v30  ;;  %v826_v32 = vmul.f32 %v824_v31, %v824_v31 }
 0x880   :  { %829 = vadd.xlane.f32.xlu1 %v826_v32 }
 0x90b   :  { %v828_v58 = vpop.xlane.xlu0 %827 }
 0x90c   :  { %v831_v0 = vmul.f32 0.020833334, %v828_v58 }
 0x90d   :  { %v830_v59 = vpop.xlane.xlu1 %829 }
 0x90e   :  { %v833_v60 = vadd.f32 1e-05, %v831_v0  ;;  %v832_v61 = vmul.f32 0.020833334, %v830_v59 }
 0x910   :  { %2168 = vrsqrt.f32 %v833_v60  ;;  %v834_v62 = vadd.f32 1e-05, %v832_v61 }
 0x912   :  { %2170 = vrsqrt.f32 %v834_v62 }
 0x91a   :  { %v2169_v19 = vpop.eup %2168 }
 0x91b   :  { %v837_v3 = vmul.f32 %v2169_v19, %v823_v29 }
 0x91c   :  { %v2171_v4 = vpop.eup %2170 }
 0x91d   :  { %v838_v5 = vmul.f32 %v2171_v4, %v824_v31  ;;  %v843_v6 = vmul.f32 %v842_v2, %v837_v3 }
 0x91f   :  { %v844_v9 = vmul.f32 %v842_v2, %v838_v5  ;;  %v2465_v10 = vadd.f32 %v848_v7, %v843_v6  ;;  %v2132_v5 = vld [vmem:[#allocation5 + $0x18c] ss:$24 sps:$4 sm:$0xff]  }
 0x921   :  { %v2467_v11 = vadd.f32 %v848_v7, %v844_v9  ;;  %v2133_v7 = vld [vmem:[#allocation5 + $0x1bc] ss:$24 sps:$4 sm:$0xff]   ;;  %v2134_v9 = vld [vmem:[#allocation5 + $0x1ec] ss:$24 sps:$4 sm:$0xff]  }
 0x923   :  { %v935_v12 = vpack.c.bf16 %v2467_v11, %v2465_v10 }
 0x925   :  { %1097 = vmatmul.mubr.bf16.vlgmr.msra.gmra.mrb[8].mxu1 %v935_v12  ;;  %1959 = vmatmul.mubr.bf16.vlgmr.msra.gmra.mrb[20].mxu0 %v935_v12  ;;  %v2135_v12 = vld [vmem:[#allocation5 + $0x21c] ss:$24 sps:$4 sm:$0xff]  }
 0x926   :  { %1964 = vmatprep.mubr.msk.bf16.mxu1 %vm2268_vm0, %v2267_v1  ;;  %2010 = vmatprep.mubr.msk.bf16.mxu0 %vm2268_vm0, %v2267_v1 }
 0x9f8   :  { %v1098_v15 = vpop.f32.mrb[8].mxu1  ;;  %v1141_v16 = vpop.f32.mrb[20].mxu0 }
 0x9f9   :  { %v1100_v20 = vpop.f32.mrb[9].mxu1  ;;  %v1960_v26 = vpop.f32.mrb[21].mxu0  ;;  %v1152_v29 = vadd.f32 %v1151_v14, %v1098_v15  ;;  %v1164_v30 = vadd.f32 %v1163_v24, %v1141_v16  ;;  %v2138_v15 = vld [vmem:[#allocation5 + $0x2ac] ss:$24 sps:$4 sm:$0xff]   ;;  %v2139_v16 = vld [vmem:[#allocation5 + $0x2dc] ss:$24 sps:$4 sm:$0xff]  }
 0x9fa   :  { %v1102_v27 = vpop.f32.mrb[10].mxu1  ;;  %v1144_v28 = vpop.f32.mrb[22].mxu0  ;;  %v1158_v37 = vadd.f32 %v1157_v17, %v1100_v20 }
 0x9fb   :  { %v1153_v31 = vadd.f32 %v1151_v14, %v1102_v27  ;;  %v1165_v32 = vadd.f32 %v1163_v24, %v1144_v28  ;;  %v1104_v34 = vpop.f32.mrb[11].mxu1  ;;  %v1961_v36 = vpop.f32.mrb[23].mxu0  ;;  %v2136_v14 = vld [vmem:[#allocation5 + $0x24c] ss:$24 sps:$4 sm:$0xff]   ;;  %v2137_v24 = vld [vmem:[#allocation5 + $0x27c] ss:$24 sps:$4 sm:$0xff]  }
 0x9fc   :  { %v1159_v38 = vadd.f32 %v1157_v17, %v1104_v34 }
 0x9fd   :  { %v1166_v39 = vpack.c.bf16 %v1153_v31, %v1152_v29  ;;  %v1235_v40 = vpack.c.bf16 %v1165_v32, %v1164_v30  ;;  %v1285_v29 = vrot.slane %v2478_v13, %v490_v43 }
 0x9fe   :  { %v1167_v8 = vpack.c.bf16 %v1159_v38, %v1158_v37 }
 0xa00   :  { %1963 = vmatpush3.bf16.xpose.msra.mxu1 %v1167_v8 }
 0xa01   :  { %1968 = vmatprep.subr.bf16.mxu1 %v2267_v1 }
 0xa07   :  { %1965 = vmatmul.mubr.bf16.vlgmr.msra.gmra.mrb[12].mxu1 %v1166_v39 }
 0xa08   :  { %1969 = vmatpush3.bf16.msra.mxu1 %v1235_v40  ;;  %1970 = vmatprep.mubr.msk.bf16.mxu1 %vm2268_vm0, %v2267_v1 }
 0xa09   :  { %1974 = vmatprep.subr.bf16.mxu1 %v2267_v1 }
 0xada   :  { %v1202_v41 = vpop.f32.mrb[12].mxu1 }
 0xadb   :  { %v1209_v42 = vmul.f32 0.14433756, %v1202_v41  ;;  %v1966_v44 = vpop.f32.mrb[13].mxu1  ;;  %v2140_v41 = vld [vmem:[#allocation5 + $0x190] ss:$24 sps:$4 sm:$0xff]  }
 0xadc   :  { %v1205_v45 = vpop.f32.mrb[14].mxu1  ;;  %1995 = vmatpush3.bf16.msra.mxu0 %v2140_v41 }
 0xadd   :  { %v1210_v48 = vmul.f32 0.14433756, %v1205_v45  ;;  %v1967_v49 = vpop.f32.mrb[15].mxu1  ;;  %v1211_v50 = vadd.f32 %v1768_v47, %v1209_v42  ;;  %v2141_v42 = vld [vmem:[#allocation5 + $0x1c0] ss:$24 sps:$4 sm:$0xff]   ;;  %1996 = vmatprep.subr.bf16.mxu0 %v2267_v1 }
 0xadf   :  { %v1213_v54 = vsel %vm418_vm1, %v1211_v50, -inf  ;;  %v1212_v55 = vadd.f32 %v1769_v51, %v1210_v48 }
 0xae0   :  { %1214 = vmax.xlane.f32.xlu0 %v1213_v54  ;;  %1997 = vmatpush3.bf16.msra.mxu0 %v2141_v42 }
 0xae1   :  { %v1216_v56 = vsel %vm418_vm1, %v1212_v55, -inf  ;;  %1998 = vmatprep.subr.bf16.mxu0 %v2267_v1 }
 0xae2   :  { %1217 = vmax.xlane.f32.xlu1 %v1216_v56  ;;  %v2142_v56 = vld [vmem:[#allocation5 + $0x1f0] ss:$24 sps:$4 sm:$0xff]  }
 0xae4   :  { %1999 = vmatpush3.bf16.msra.mxu0 %v2142_v56 }
 0xae5   :  { %2000 = vmatprep.subr.bf16.mxu0 %v2267_v1 }
 0xb6d   :  { %v1215_v57 = vpop.xlane.xlu0 %1214 }
 0xb6e   :  { %v1219_v21 = vsub.f32 %v1211_v50, %v1215_v57  ;;  %v2143_v57 = vld [vmem:[#allocation5 + $0x220] ss:$24 sps:$4 sm:$0xff]  }
 0xb6f   :  { %v1218_v58 = vpop.xlane.xlu1 %1217  ;;  %2001 = vmatpush3.bf16.msra.mxu0 %v2143_v57 }
 0xb70   :  { %v1221_v0 = vmul.f32 1.442695, %v1219_v21  ;;  %v1220_v59 = vsub.f32 %v1212_v55, %v1218_v58  ;;  %2002 = vmatprep.subr.bf16.mxu0 %v2267_v1  ;;  %v2144_v21 = vld [vmem:[#allocation5 + $0x250] ss:$24 sps:$4 sm:$0xff]   ;;  %v2145_v58 = vld [vmem:[#allocation5 + $0x280] ss:$24 sps:$4 sm:$0xff]  }
 0xb72   :  { %2172 = vpow2.f32 %v1221_v0  ;;  %v1223_v60 = vmul.f32 1.442695, %v1220_v59  ;;  %v2146_v0 = vld [vmem:[#allocation5 + $0x2b0] ss:$24 sps:$4 sm:$0xff]   ;;  %v2147_v59 = vld [vmem:[#allocation5 + $0x2e0] ss:$24 sps:$4 sm:$0xff]  }
 0xb73   :  { %2003 = vmatpush3.bf16.msra.mxu0 %v2144_v21 }
 0xb74   :  { %2174 = vpow2.f32 %v1223_v60  ;;  %2004 = vmatprep.subr.bf16.mxu0 %v2267_v1  ;;  %v2148_v60 = vld [vmem:[#allocation5 + $0x194] ss:$24 sps:$4 sm:$0xff]  }
 0xb77   :  { %2005 = vmatpush3.bf16.msra.mxu0 %v2145_v58 }
 0xb78   :  { %2006 = vmatprep.subr.bf16.mxu0 %v2267_v1 }
 0xb7b   :  { %2007 = vmatpush3.bf16.msra.mxu0 %v2146_v0 }
 0xb7c   :  { %v2173_v61 = vpop.eup %2172  ;;  %2008 = vmatprep.subr.bf16.mxu0 %v2267_v1 }
 0xb7d   :  { %v1225_v47 = vsel %vm418_vm1, %v2173_v61, 0.0 }
 0xb7e   :  { %v2175_v62 = vpop.eup %2174  ;;  %1226 = vadd.xlane.f32.xlu0 %v1225_v47  ;;  %v2150_v47 = vld [vmem:[#allocation5 + $0x1f4] ss:$24 sps:$4 sm:$0xff]  }
 0xb7f   :  { %v1228_v46 = vsel %vm418_vm1, %v2175_v62, 0.0  ;;  %2009 = vmatpush3.bf16.msra.mxu0 %v2147_v59 }
 0xb80   :  { %1229 = vadd.xlane.f32.xlu1 %v1228_v46  ;;  %v2152_v46 = vld [vmem:[#allocation5 + $0x254] ss:$24 sps:$4 sm:$0xff]  }
 0xc0b   :  { %v1227_v51 = vpop.xlane.xlu0 %1226 }
 0xc0c   :  { %2176 = vrcp.f32 %v1227_v51  ;;  %v2153_v51 = vld [vmem:[#allocation5 + $0x284] ss:$24 sps:$4 sm:$0xff]  }
 0xc0d   :  { %v1230_v63 = vpop.xlane.xlu1 %1229 }
 0xc0e   :  { %2178 = vrcp.f32 %v1230_v63 }
 0xc16   :  { %v2177_v2 = vpop.eup %2176 }
 0xc17   :  { %v1233_v3 = vmul.f32 %v2177_v2, %v2173_v61  ;;  %v2149_v61 = vld [vmem:[#allocation5 + $0x1c4] ss:$24 sps:$4 sm:$0xff]  }
 0xc18   :  { %v2179_v19 = vpop.eup %2178 }
 0xc19   :  { %v1234_v4 = vmul.f32 %v2179_v19, %v2175_v62  ;;  %v2151_v62 = vld [vmem:[#allocation5 + $0x224] ss:$24 sps:$4 sm:$0xff]  }
 0xc1b   :  { %v1236_v6 = vpack.c.bf16 %v1234_v4, %v1233_v3 }
 0xc1d   :  { %1971 = vmatmul.mubr.msk.bf16.vlgmr.msra.gmra.mrb[16].mxu1 %vm418_vm1, %v1236_v6  ;;  %v1406_v6 = vrot.slane %v2478_v13, %v611_v33  ;;  %v1419_v33 = vrot.slane %v2478_v13, %v624_v53 }
 0xc1e   :  { %1975 = vmatpush3.bf16.msra.mxu1 %v2132_v5  ;;  %1990 = vmatprep.mubr.msk.bf16.mxu1 %vm2268_vm0, %v2267_v1 }
 0xc1f   :  { %1976 = vmatprep.subr.bf16.mxu1 %v2267_v1 }
 0xc22   :  { %1977 = vmatpush3.bf16.msra.mxu1 %v2133_v7 }
 0xc23   :  { %1978 = vmatprep.subr.bf16.mxu1 %v2267_v1 }
 0xc26   :  { %1979 = vmatpush3.bf16.msra.mxu1 %v2134_v9 }
 0xc27   :  { %1980 = vmatprep.subr.bf16.mxu1 %v2267_v1 }
 0xc2a   :  { %1981 = vmatpush3.bf16.msra.mxu1 %v2135_v12 }
 0xc2b   :  { %1982 = vmatprep.subr.bf16.mxu1 %v2267_v1 }
 0xc2e   :  { %1983 = vmatpush3.bf16.msra.mxu1 %v2136_v14 }
 0xc2f   :  { %1984 = vmatprep.subr.bf16.mxu1 %v2267_v1 }
 0xc32   :  { %1985 = vmatpush3.bf16.msra.mxu1 %v2137_v24 }
 0xc33   :  { %1986 = vmatprep.subr.bf16.mxu1 %v2267_v1 }
 0xc36   :  { %1987 = vmatpush3.bf16.msra.mxu1 %v2138_v15  ;;  %v1412_v15 = vrot.slane %v2478_v13, %v617_v35 }
 0xc37   :  { %1988 = vmatprep.subr.bf16.mxu1 %v2267_v1 }
 0xc3a   :  { %1989 = vmatpush3.bf16.msra.mxu1 %v2139_v16 }
 0xc3b   :  { %2014 = vmatprep.subr.bf16.mxu1 %v2267_v1 }
 0xcf0   :  { %v1274_v17 = vpop.f32.mrb[16].mxu1 }
 0xcf1   :  { %v1972_v20 = vpop.f32.mrb[17].mxu1 }
 0xcf2   :  { %v1277_v26 = vpop.f32.mrb[18].mxu1 }
 0xcf3   :  { %v1281_v27 = vpack.c.bf16 %v1277_v26, %v1274_v17  ;;  %v1973_v28 = vpop.f32.mrb[19].mxu1 }
 0xcf4   :  { %v2155_v28 = vld [vmem:[#allocation5 + $0x2e4] ss:$24 sps:$4 sm:$0xff]  }
 0xcf5   :  { %1991 = vmatmul.mubr.bf16.vlgmr.msra.gmra.mrb[20].mxu1 %v1281_v27  ;;  %v2154_v27 = vld [vmem:[#allocation5 + $0x2b4] ss:$24 sps:$4 sm:$0xff]  }
 0xcf6   :  { %2030 = vmatprep.mubr.msk.bf16.mxu1 %vm2268_vm0, %v2267_v1  ;;  %2015 = vmatpush3.bf16.msra.mxu1 %v2148_v60 }
 0xcf7   :  { %2016 = vmatprep.subr.bf16.mxu1 %v2267_v1 }
 0xcfa   :  { %2017 = vmatpush3.bf16.msra.mxu1 %v2149_v61  ;;  %v1716_v61 = vld [vmem:[%s2574_s3 + $0x18] sm:$0x3] }
 0xcfb   :  { %2018 = vmatprep.subr.bf16.mxu1 %v2267_v1 }
 0xcfe   :  { %2019 = vmatpush3.bf16.msra.mxu1 %v2150_v47  ;;  %v1636_v47 = vrot.slane %v1716_v61, %v2339_v23 }
 0xcff   :  { %2020 = vmatprep.subr.bf16.mxu1 %v2267_v1 }
 0xd02   :  { %2021 = vmatpush3.bf16.msra.mxu1 %v2151_v62 }
 0xd03   :  { %2022 = vmatprep.subr.bf16.mxu1 %v2267_v1 }
 0xd06   :  { %2023 = vmatpush3.bf16.msra.mxu1 %v2152_v46 }
 0xd07   :  { %2024 = vmatprep.subr.bf16.mxu1 %v2267_v1 }
 0xd0a   :  { %2025 = vmatpush3.bf16.msra.mxu1 %v2153_v51 }
 0xd0b   :  { %2026 = vmatprep.subr.bf16.mxu1 %v2267_v1 }
 0xd0e   :  { %2027 = vmatpush3.bf16.msra.mxu1 %v2154_v27 }
 0xd0f   :  { %2028 = vmatprep.subr.bf16.mxu1 %v2267_v1  ;;  %v1515_v1 = vrot.slane %v2478_v13, %v720_v18 }
 0xd12   :  { %2029 = vmatpush3.bf16.msra.mxu1 %v2155_v28 }
 0xdc8   :  { %v1368_v30 = vpop.f32.mrb[20].mxu1 }
 0xdc9   :  { %v1369_v31 = vadd.f32 %v1368_v30, %v1285_v29  ;;  %v1992_v32 = vpop.f32.mrb[21].mxu1 }
 0xdca   :  { %v1371_v34 = vpop.f32.mrb[22].mxu1 }
 0xdcb   :  { %v1375_v36 = vadd.f32 %v1369_v31, %v2465_v10  ;;  %v1372_v37 = vadd.f32 %v1371_v34, %v1285_v29  ;;  %v1993_v38 = vpop.f32.mrb[23].mxu1 }
 0xdcd   :  { %v1376_v39 = vadd.f32 %v1372_v37, %v2467_v11  ;;  %v1377_v40 = vmul.f32 %v2405_v52, %v1375_v36 }
 0xdcf   :  { %1379 = vadd.xlane.f32.xlu0 %v1377_v40  ;;  %v1378_v8 = vmul.f32 %v2405_v52, %v1376_v39 }
 0xdd1   :  { %1381 = vadd.xlane.f32.xlu1 %v1378_v8 }
 0xe5c   :  { %v1380_v43 = vpop.xlane.xlu0 %1379 }
 0xe5d   :  { %v1383_v10 = vmul.f32 0.020833334, %v1380_v43 }
 0xe5e   :  { %v1382_v44 = vpop.xlane.xlu1 %1381 }
 0xe5f   :  { %v1385_v45 = vsub.f32 %v1375_v36, %v1383_v10  ;;  %v1384_v48 = vmul.f32 0.020833334, %v1382_v44 }
 0xe61   :  { %v1386_v11 = vsub.f32 %v1376_v39, %v1384_v48  ;;  %v1387_v49 = vmul.f32 %v2405_v52, %v1385_v45 }
 0xe63   :  { %v1389_v50 = vmul.f32 %v1387_v49, %v1387_v49  ;;  %v1388_v54 = vmul.f32 %v2405_v52, %v1386_v11 }
 0xe65   :  { %1391 = vadd.xlane.f32.xlu0 %v1389_v50  ;;  %v1390_v55 = vmul.f32 %v1388_v54, %v1388_v54 }
 0xe67   :  { %1393 = vadd.xlane.f32.xlu1 %v1390_v55 }
 0xef2   :  { %v1392_v63 = vpop.xlane.xlu0 %1391 }
 0xef3   :  { %v1395_v2 = vmul.f32 0.020833334, %v1392_v63 }
 0xef4   :  { %v1394_v19 = vpop.xlane.xlu1 %1393 }
 0xef5   :  { %v1397_v3 = vadd.f32 1e-05, %v1395_v2  ;;  %v1396_v4 = vmul.f32 0.020833334, %v1394_v19 }
 0xef7   :  { %2180 = vrsqrt.f32 %v1397_v3  ;;  %v1398_v5 = vadd.f32 1e-05, %v1396_v4 }
 0xef9   :  { %2182 = vrsqrt.f32 %v1398_v5 }
 0xf01   :  { %v2181_v7 = vpop.eup %2180 }
 0xf02   :  { %v1401_v9 = vmul.f32 %v2181_v7, %v1387_v49 }
 0xf03   :  { %v2183_v12 = vpop.eup %2182 }
 0xf04   :  { %v1402_v14 = vmul.f32 %v2183_v12, %v1388_v54  ;;  %v1407_v24 = vmul.f32 %v1406_v6, %v1401_v9 }
 0xf06   :  { %v1408_v16 = vmul.f32 %v1406_v6, %v1402_v14  ;;  %v1413_v17 = vadd.f32 %v1412_v15, %v1407_v24 }
 0xf08   :  { %v1414_v20 = vadd.f32 %v1412_v15, %v1408_v16 }
 0xf0a   :  { %v1415_v26 = vpack.c.bf16 %v1414_v20, %v1413_v17 }
 0xf0c   :  { %2011 = vmatmul.mubr.bf16.vlgmr.msra.gmra.mrb[24].mxu0 %v1415_v26 }
 0xfdf   :  { %v1502_v29 = vpop.f32.mrb[24].mxu0 }
 0xfe0   :  { %v1503_v30 = vadd.f32 %v1502_v29, %v1419_v33  ;;  %v2012_v31 = vpop.f32.mrb[25].mxu0 }
 0xfe1   :  { %v1505_v32 = vpop.f32.mrb[26].mxu0 }
 0xfe2   :  { %v1506_v35 = vadd.f32 %v1505_v32, %v1419_v33  ;;  %v2013_v34 = vpop.f32.mrb[27].mxu0  ;;  %v1509_v36 = vmax.f32 %v1503_v30, 0.0 }
 0xfe4   :  { %v1510_v37 = vmax.f32 %v1506_v35, 0.0 }
 0xfe6   :  { %v1511_v38 = vpack.c.bf16 %v1510_v37, %v1509_v36 }
 0xfe8   :  { %2031 = vmatmul.mubr.bf16.vlgmr.msra.gmra.mrb[24].mxu1 %v1511_v38 }
0x10bb   :  { %v1598_v39 = vpop.f32.mrb[24].mxu1 }
0x10bc   :  { %v1599_v40 = vadd.f32 %v1598_v39, %v1515_v1  ;;  %v2032_v8 = vpop.f32.mrb[25].mxu1 }
0x10bd   :  { %v1601_v41 = vpop.f32.mrb[26].mxu1 }
0x10be   :  { %v1605_v42 = vadd.f32 %v1599_v40, %v1413_v17  ;;  %v1602_v53 = vadd.f32 %v1601_v41, %v1515_v1  ;;  %v2033_v43 = vpop.f32.mrb[27].mxu1 }
0x10c0   :  { %v1606_v10 = vadd.f32 %v1602_v53, %v1414_v20  ;;  %v1607_v44 = vmul.f32 %v2405_v52, %v1605_v42 }
0x10c2   :  { %1609 = vadd.xlane.f32.xlu0 %v1607_v44  ;;  %v1608_v45 = vmul.f32 %v2405_v52, %v1606_v10 }
0x10c4   :  { %1611 = vadd.xlane.f32.xlu1 %v1608_v45 }
0x114f   :  { %v1610_v48 = vpop.xlane.xlu0 %1609 }
0x1150   :  { %v1613_v11 = vmul.f32 0.020833334, %v1610_v48 }
0x1151   :  { %v1612_v49 = vpop.xlane.xlu1 %1611 }
0x1152   :  { %v1615_v22 = vsub.f32 %v1605_v42, %v1613_v11  ;;  %v1614_v50 = vmul.f32 0.020833334, %v1612_v49 }
0x1154   :  { %v1616_v18 = vsub.f32 %v1606_v10, %v1614_v50  ;;  %v1617_v13 = vmul.f32 %v2405_v52, %v1615_v22 }
0x1156   :  { %v1619_v54 = vmul.f32 %v1617_v13, %v1617_v13  ;;  %v1618_v55 = vmul.f32 %v2405_v52, %v1616_v18  ;;  %v1642_v52 = vrot.slane %v1716_v61, %v2347_v25 }
0x1158   :  { %1621 = vadd.xlane.f32.xlu0 %v1619_v54  ;;  %v1620_v56 = vmul.f32 %v1618_v55, %v1618_v55 }
0x115a   :  { %1623 = vadd.xlane.f32.xlu1 %v1620_v56 }
0x11e5   :  { %v1622_v57 = vpop.xlane.xlu0 %1621 }
0x11e6   :  { %v1625_v21 = vmul.f32 0.020833334, %v1622_v57 }
0x11e7   :  { %v1624_v58 = vpop.xlane.xlu1 %1623 }
0x11e8   :  { %v1627_v0 = vadd.f32 1e-05, %v1625_v21  ;;  %v1626_v59 = vmul.f32 0.020833334, %v1624_v58 }
0x11ea   :  { %2184 = vrsqrt.f32 %v1627_v0  ;;  %v1628_v60 = vadd.f32 1e-05, %v1626_v59 }
0x11ec   :  { %2186 = vrsqrt.f32 %v1628_v60 }
0x11f4   :  { %v2185_v62 = vpop.eup %2184 }
0x11f5   :  { %v1631_v46 = vmul.f32 %v2185_v62, %v1617_v13 }
0x11f6   :  { %v2187_v51 = vpop.eup %2186 }
0x11f7   :  { %v1632_v63 = vmul.f32 %v2187_v51, %v1618_v55  ;;  %v1637_v2 = vmul.f32 %v1636_v47, %v1631_v46 }
0x11f9   :  { %v1638_v19 = vmul.f32 %v1636_v47, %v1632_v63  ;;  %v1643_v3 = vadd.f32 %v1642_v52, %v1637_v2 }
0x11fb   :  { %v1644_v4 = vadd.f32 %v1642_v52, %v1638_v19  ;;  %1645 = vst [vmem:[#allocation7] sm:$0xff] %v1643_v3 }
0x11fd   :  { %1646 = vst [vmem:[#allocation7 + $0x8] sm:$0xff] %v1644_v4 }
0x11fe   :  { %2243 = shalt.err (!%p2240_p6)
}
0x11ff   :  { %s2244_s30 = scalar_lea.hbm %s2575_s4, 256 }
0x1200   :  { %p2245_p7 = scmp.ne.s32.totalorder %s2575_s4, %s2244_s30  ;;  %p2248_p8 = scmp.lt.u32.totalorder %s2244_s30, %s2575_s4 }
0x1202   :  { %p2250_p9 = pnand %p2248_p8, %p2245_p7 }
0x1204   :  { %2253 = shalt.err (!%p2250_p9)
}
0x1205   :  { %1658 = dma.vmem_to_hbm [thread:$0]  %s1653_s27, 256, %s2575_s4, [#allocation4], %s2261_s25, %s2261_s25, %s2262_s26  }
0x1206   :  { %2258 = dma.done.wait [#allocation4], 256  }
0x1207   :  { %2259 = vsyncadd [#allocation4], 4294967040 }
0x1208   :  { %1662 = vsyncpa [#allocation3], 1 }
0x1209   :  { %1663 = vsyncpa [#allocation6], 1 }
0x120a   :  { %1664 = vsyncpa [#allocation4], 1 }

</bundles_post_ra>
